<compile_context>
chip_gen: v7x
topology: tpu7x:2x2x1
jax: 0.10.0
libtpu: 0.0.40
codegen_flags: <defaults>
</compile_context>

<pallas_src>
import functools

import jax
import jax.numpy as jnp
import numpy as np
from jax.experimental import pallas as pl
from jax.experimental.pallas import tpu as pltpu

_EPS = 1e-12  # matches torch.nn.functional.normalize default


def _cdiv(a, b):
    return -(-a // b)


def _round_up(a, b):
    return _cdiv(a, b) * b


def netvlad_kernel(x_ref, w_ref, c_ref, eye_ref, out_ref, xs_acc, a_acc, *,
                   intranorm, compute_dtype, tile_n, n_valid, approx_recip):
    # x_ref  : (D, TN)  slice of the native (B, D, N) input (D sublanes, N lanes)
    # w_ref  : (K, D)   score projection, already in compute_dtype
    # c_ref  : (K, D)   cluster centers (f32, transposed once in the wrapper)
    # eye_ref: (D, D)   precomputed f32 identity (constant-index input, loaded once)
    # out_ref: (K, D)   per-batch descriptor, lane-dense in D
    # xs_acc : (D, K) f32 accumulator of sum_n s[k,n] * x[d,n]
    # a_acc  : (K, 1) f32 accumulator of sum_n s[k,n]
    n = pl.program_id(1)

    @pl.when(n == 0)
    def _init():
        xs_acc[...] = jnp.zeros_like(xs_acc)
        a_acc[...] = jnp.zeros_like(a_acc)

    # Single per-tile cast of the big operand to the MXU compute dtype.
    x = x_ref[...].astype(compute_dtype)              # (D, TN)
    w = w_ref[...]                                    # (K, D), compute_dtype

    # 1x1 Conv1d == (K, D) @ (D, TN); both operands in natural MXU orientation.
    scores = jax.lax.dot_general(
        w, x, (((1,), (0,)), ((), ())),
        preferred_element_type=jnp.float32)           # (K, TN) f32

    # Softmax over clusters K (sublane axis); per-point, so it tiles over N.
    m = jnp.max(scores, axis=0, keepdims=True)        # (1, TN)
    e = jnp.exp(scores - m)                           # (K, TN)
    denom = jnp.sum(e, axis=0, keepdims=True)         # (1, TN)
    if approx_recip:
        inv = pl.reciprocal(denom, approx=True)       # EUP vrcp: free slot
    else:
        inv = pl.reciprocal(denom)
    s = e * inv                                       # (K, TN) f32

    # Zero the softmax columns that correspond to padded (zero) input points
    # so they contribute neither to a_acc nor to xs_acc.
    if n_valid is not None:
        col = tile_n * n + jax.lax.broadcasted_iota(jnp.int32, s.shape, 1)
        s = jnp.where(col < n_valid, s, 0.0)

    # a[k] += sum_n s[k, n]
    a_acc[...] += jnp.sum(s, axis=1, keepdims=True)   # (K, 1)

    # xs[d, k] += sum_n x[d, n] * s[k, n]
    # x stays in stored orientation (natural LHS); only the smaller softmax
    # tensor is the transposed MXU operand (standard "trans_b" dot).
    xs_acc[...] += jax.lax.dot_general(
        x, s.astype(compute_dtype), (((1,), (1,)), ((), ())),
        preferred_element_type=jnp.float32)           # (D, K)

    @pl.when(n == pl.num_programs(1) - 1)
    def _finalize():
        a = a_acc[...]                                # (K, 1)
        c = c_ref[...]                                # (K, D) f32

        # One small per-batch transpose (D,K)->(K,D), done on the MXU via the
        # precomputed identity so the accumulator never hits an XLU relayout
        # and the output store stays lane-dense in D.
        xs_kd = jax.lax.dot_general(
            xs_acc[...], eye_ref[...], (((0,), (0,)), ((), ())),
            preferred_element_type=jnp.float32)       # (K, D)

        desc = xs_kd - c * a                          # (K, D)

        # Fused intra + global normalization (single scale of desc).
        ss = jnp.sum(desc * desc, axis=1, keepdims=True)          # (K, 1)
        if intranorm:
            inv_intra = 1.0 / jnp.maximum(jnp.sqrt(ss), _EPS)     # (K, 1)
        else:
            inv_intra = jnp.ones_like(ss)
        g2 = jnp.sum(ss * inv_intra * inv_intra, keepdims=True)   # (1, 1)
        inv_g = 1.0 / jnp.maximum(jnp.sqrt(g2), _EPS)
        out_ref[...] = (desc * (inv_intra * inv_g)).astype(out_ref.dtype)


def _vmem_limit_bytes():
    """Generation-aware scoped-VMEM limit (<= ~3/4 of physical, capped at 96 MiB)."""
    cap = 128 * 1024 * 1024
    try:
        info = pltpu.get_tpu_info()
        cap = int(getattr(info, "vmem_capacity_bytes", cap)) or cap
    except Exception:
        pass
    return int(min(cap * 3 // 4, 96 * 1024 * 1024))


def _pick_tile_n(N, D, x_itemsize, x_budget_bytes):
    """Largest lane-aligned N tile whose double-buffered pair fits the budget,
    adjusted so padding waste stays small."""
    per_col = 2 * D * x_itemsize                      # double-buffered bytes / lane column
    max_tile = (max(x_budget_bytes, per_col * 128) // per_col) // 128 * 128
    max_tile = int(max(128, min(8192, max_tile)))     # diminishing returns beyond 8K
    n_pad_min = _round_up(N, 128)
    if max_tile >= n_pad_min:
        return n_pad_min                              # single padded tile
    steps = _cdiv(N, max_tile)
    return int(_round_up(_cdiv(N, steps), 128))       # balance steps, minimal padding


def netvlad_forward(x_bdn, w_kd, centers_dk, *, intranorm=True, tile_n=None,
                    compute_dtype=jnp.bfloat16, approx_softmax_recip=True):
    """NetVLADLayer.forward.

    x_bdn:      (B, D, N) features, native PyTorch Conv1d layout (f32 or bf16).
    w_kd:       (K, D) score-projection weight (Conv1d weight squeezed; no bias).
    centers_dk: (D, K) cluster centers.
    Returns (B, D*K) L2-normalized f32 descriptors.
    """
    B, D, N = x_bdn.shape
    K = centers_dk.shape[1]
    compute_dtype = jnp.dtype(compute_dtype)
    x_itemsize = x_bdn.dtype.itemsize

    # Derive the x-tile budget from the actual VMEM plan (everything else is tiny).
    vmem_limit = _vmem_limit_bytes()
    fixed_bytes = (2 * K * D * compute_dtype.itemsize   # w (double-buffered)
                   + 2 * K * D * 4                      # centers
                   + 2 * D * D * 4                      # identity
                   + 2 * K * D * 4                      # out block
                   + D * K * 4 + K * 4                  # accumulator scratch
                   + 512 * 1024)                        # compiler headroom
    x_budget = max(vmem_limit // 2 - fixed_bytes, 2 * D * 128 * x_itemsize)

    if tile_n is None:
        tile_n = _pick_tile_n(N, D, x_itemsize, x_budget)
    tile_n = int(_round_up(min(int(tile_n), _round_up(N, 128)), 128))
    n_steps = _cdiv(N, tile_n)
    n_pad = n_steps * tile_n

    # Pad N up to the tile multiple; padded columns are masked in-kernel.
    if n_pad != N:
        x_bdn = jnp.pad(x_bdn, ((0, 0), (0, 0), (0, n_pad - N)))

    # Tiny one-time parameter prep: centers transposed to (K, D) f32, score
    # weights pre-cast to the MXU compute dtype, identity for the finalize
    # transpose staged once as a constant-index input.
    c_kd = jnp.transpose(centers_dk).astype(jnp.float32)
    w_kd = w_kd.astype(compute_dtype)
    eye = jnp.eye(D, dtype=jnp.float32)

    kernel = functools.partial(
        netvlad_kernel,
        intranorm=intranorm,
        compute_dtype=compute_dtype,
        tile_n=tile_n,
        n_valid=(N if n_pad != N else None),
        approx_recip=approx_softmax_recip,
    )

    cost = pl.CostEstimate(
        flops=4 * B * K * D * n_pad,
        transcendentals=B * K * n_pad,
        bytes_accessed=(B * D * n_pad * x_itemsize + B * K * D * 4
                        + K * D * (compute_dtype.itemsize + 4) + D * D * 4),
    )

    out_kd = pl.pallas_call(
        kernel,
        out_shape=jax.ShapeDtypeStruct((B, K, D), jnp.float32),
        grid_spec=pltpu.PrefetchScalarGridSpec(
            num_scalar_prefetch=0,
            grid=(B, n_steps),
            in_specs=[
                pl.BlockSpec((pl.Squeezed(), D, tile_n), lambda b, n: (b, 0, n)),
                pl.BlockSpec((K, D), lambda b, n: (0, 0)),
                pl.BlockSpec((K, D), lambda b, n: (0, 0)),
                pl.BlockSpec((D, D), lambda b, n: (0, 0)),
            ],
            out_specs=pl.BlockSpec((pl.Squeezed(), K, D), lambda b, n: (b, 0, 0)),
            scratch_shapes=[
                pltpu.VMEM((D, K), jnp.float32),   # xs accumulator
                pltpu.VMEM((K, 1), jnp.float32),   # sum of softmax scores
            ],
        ),
        compiler_params=pltpu.CompilerParams(
            dimension_semantics=("parallel", "arbitrary"),
            vmem_limit_bytes=vmem_limit,
        ),
        cost_estimate=cost,
    )(x_bdn, w_kd, c_kd, eye)

    # PyTorch's .view(b, -1) flattens (D, K) row-major (index d*K + k); the
    # kernel emits (K, D) for lane-dense stores, so reorder the tiny output here.
    return jnp.transpose(out_kd, (0, 2, 1)).reshape(B, D * K)


def netvlad_reference(x_bdn, w_kd, centers_dk, intranorm=True):
    """Pure-JAX reference mirroring the PyTorch forward literally."""
    eps = _EPS
    B = x_bdn.shape[0]
    scores = jnp.einsum('kd,bdn->bkn', w_kd, x_bdn)                # (B, K, N)
    scores = jax.nn.softmax(scores, axis=1)
    diff = x_bdn[:, :, None, :] - centers_dk[None, :, :, None]     # (B, D, K, N)
    desc = (scores[:, None, :, :] * diff).sum(-1)                  # (B, D, K)
    if intranorm:
        desc = desc / jnp.maximum(
            jnp.linalg.norm(desc, axis=1, keepdims=True), eps)
    desc = desc.reshape(B, -1)
    desc = desc / jnp.maximum(
        jnp.linalg.norm(desc, axis=1, keepdims=True), eps)
    return desc


if __name__ == "__main__":
    # Small shapes consistent with the module (input_dim=D, K clusters, N points).
    # N is deliberately NOT a multiple of 128 to exercise the pad+mask path.
    B, D, K, N = 2, 128, 64, 1000

    key = jax.random.PRNGKey(0)
    kx, kw, kc = jax.random.split(key, 3)

    # Input features (PyTorch layout: (B, D, N)) — consumed natively, no transpose.
    x = jax.random.normal(kx, (B, D, N), dtype=jnp.float32)

    # score_proj: Conv1d(D, K, kernel_size=1, bias=False) -> weight (K, D, 1);
    # we use its natural squeezed (K, D) layout.
    w_bound = float(np.sqrt(1.0 / D))
    w_kd = jax.random.uniform(kw, (K, D), jnp.float32, -w_bound, w_bound)

    # centers: xavier_uniform over shape (D, K)
    c_bound = float(np.sqrt(6.0 / (D + K)))
    centers = jax.random.uniform(kc, (D, K), jnp.float32, -c_bound, c_bound)

    ref = netvlad_reference(x, w_kd, centers)

    # 1) Default fast path: bf16 MXU operands, small explicit tile so the
    #    multi-step accumulator + padded-lane masking path is exercised.
    out_fast = netvlad_forward(x, w_kd, centers, tile_n=256)
    jax.block_until_ready(out_fast)
    assert out_fast.shape == (B, D * K), out_fast.shape
    np.testing.assert_allclose(np.asarray(out_fast), np.asarray(ref),
                               rtol=5e-2, atol=3e-3)

    # 2) f32 compute + exact reciprocal, auto-picked tile (single padded tile):
    #    tight numerical check of the accumulation / masking / normalization.
    out_f32 = netvlad_forward(x, w_kd, centers,
                              compute_dtype=jnp.float32,
                              approx_softmax_recip=False)
    jax.block_until_ready(out_f32)
    np.testing.assert_allclose(np.asarray(out_f32), np.asarray(ref),
                               rtol=2e-4, atol=2e-5)

    print("KERNEL_OK")
</pallas_src>

<mosaic_0001>
module attributes {stable_mosaic.version = 11 : i64} {
  func.func @netvlad_kernel(%arg0: i32, %arg1: i32, %arg2: memref<1x128x256xf32, #tpu.memory_space<vmem>>, %arg3: memref<64x128xbf16, #tpu.memory_space<vmem>>, %arg4: memref<64x128xf32, #tpu.memory_space<vmem>>, %arg5: memref<128x128xf32, #tpu.memory_space<vmem>>, %arg6: memref<1x64x128xf32, #tpu.memory_space<vmem>>, %arg7: memref<128x64xf32, #tpu.memory_space<vmem>>, %arg8: memref<64x1xf32, #tpu.memory_space<vmem>>) attributes {dimension_semantics = [#tpu.dimension_semantics<parallel>, #tpu.dimension_semantics<arbitrary>], iteration_bounds = array<i64: 2, 4>, scalar_prefetch = 0 : i64, scratch_operands = 2 : i64, tpu.core_type = #tpu.core_type<tc>, window_params = [{transform_indices = @transform_0, window_bounds = array<i64: 1, 128, 256>}, {pipeline_mode = #tpu.pipeline_mode<synchronous>, transform_indices = @transform_1, window_bounds = array<i64: 64, 128>}, {pipeline_mode = #tpu.pipeline_mode<synchronous>, transform_indices = @transform_2, window_bounds = array<i64: 64, 128>}, {pipeline_mode = #tpu.pipeline_mode<synchronous>, transform_indices = @transform_3, window_bounds = array<i64: 128, 128>}, {transform_indices = @transform_4, window_bounds = array<i64: 1, 64, 128>}]} {
    %c0_i32 = arith.constant 0 : i32
    %0 = arith.cmpi eq, %arg1, %c0_i32 : i32
    %1 = arith.extui %0 : i1 to i32
    %c0_i32_0 = arith.constant 0 : i32
    %2 = arith.cmpi ne, %1, %c0_i32_0 : i32
    scf.if %2 {
      %cst_19 = arith.constant 0.000000e+00 : f32
      %39 = vector.broadcast %cst_19 : f32 to vector<128x64xf32>
      %c0_20 = arith.constant 0 : index
      %c0_21 = arith.constant 0 : index
      %40 = vector.load %arg7[%c0_20, %c0_21] : memref<128x64xf32, #tpu.memory_space<vmem>>, vector<128x64xf32>
      tpu.vector_store %arg7[%c0_20, %c0_21], %39 {strides = array<i32>} : memref<128x64xf32, #tpu.memory_space<vmem>>, vector<128x64xf32>,
      %cst_22 = arith.constant 0.000000e+00 : f32
      %41 = vector.broadcast %cst_22 : f32 to vector<64x1xf32>
      %c0_23 = arith.constant 0 : index
      %c0_24 = arith.constant 0 : index
      %42 = vector.load %arg8[%c0_23, %c0_24] : memref<64x1xf32, #tpu.memory_space<vmem>>, vector<64x1xf32>
      tpu.vector_store %arg8[%c0_23, %c0_24], %41 {strides = array<i32>} : memref<64x1xf32, #tpu.memory_space<vmem>>, vector<64x1xf32>,
    } else {
    }
    %c0 = arith.constant 0 : index
    %c0_1 = arith.constant 0 : index
    %c0_2 = arith.constant 0 : index
    %3 = vector.load %arg2[%c0, %c0_1, %c0_2] : memref<1x128x256xf32, #tpu.memory_space<vmem>>, vector<1x128x256xf32>
    %4 = vector.shape_cast %3 : vector<1x128x256xf32> to vector<128x256xf32>
    %5 = arith.truncf %4 : vector<128x256xf32> to vector<128x256xbf16>
    %c0_3 = arith.constant 0 : index
    %c0_4 = arith.constant 0 : index
    %6 = vector.load %arg3[%c0_3, %c0_4] : memref<64x128xbf16, #tpu.memory_space<vmem>>, vector<64x128xbf16>
    %cst = arith.constant dense<0.000000e+00> : vector<64x256xf32>
    %7 = tpu.matmul %6, %5, %cst {dimension_numbers = #tpu.dot_dimension_numbers<[1], [0], [0], [1], [0, 0, 1, 1], [], []>} : vector<64x128xbf16>, vector<128x256xbf16>, vector<64x256xf32> -> vector<64x256xf32>
    %cst_5 = arith.constant dense<0xFF800000> : vector<256xf32>
    %8 = vector.multi_reduction <maximumf>, %7, %cst_5 [0] : vector<64x256xf32> to vector<256xf32>
    %9 = vector.shape_cast %8 : vector<256xf32> to vector<1x256xf32>
    %10 = vector.broadcast %9 : vector<1x256xf32> to vector<64x256xf32>
    %11 = arith.subf %7, %10 : vector<64x256xf32>
    %12 = math.exp %11 : vector<64x256xf32>
    %cst_6 = arith.constant dense<0.000000e+00> : vector<256xf32>
    %13 = vector.multi_reduction <add>, %12, %cst_6 [0] : vector<64x256xf32> to vector<256xf32>
    %14 = vector.shape_cast %13 : vector<256xf32> to vector<1x256xf32>
    %15 = tpu.reciprocal %14 {approx = true} : vector<1x256xf32> -> vector<1x256xf32>
    %16 = vector.broadcast %15 : vector<1x256xf32> to vector<64x256xf32>
    %17 = arith.mulf %12, %16 : vector<64x256xf32>
    %c256_i32 = arith.constant 256 : i32
    %18 = arith.muli %c256_i32, %arg1 : i32
    %19 = tpu.iota {dimensions = array<i32: 1>} : vector<64x256xi32>
    %20 = vector.broadcast %18 : i32 to vector<64x256xi32>
    %21 = arith.addi %20, %19 : vector<64x256xi32>
    %c1000_i32 = arith.constant 1000 : i32
    %22 = vector.broadcast %c1000_i32 : i32 to vector<64x256xi32>
    %23 = arith.cmpi slt, %21, %22 : vector<64x256xi32>
    %cst_7 = arith.constant 0.000000e+00 : f32
    %24 = vector.broadcast %cst_7 : f32 to vector<64x256xf32>
    %25 = arith.select %23, %17, %24 : vector<64x256xi1>, vector<64x256xf32>
    %c0_8 = arith.constant 0 : index
    %c0_9 = arith.constant 0 : index
    %26 = vector.load %arg8[%c0_8, %c0_9] : memref<64x1xf32, #tpu.memory_space<vmem>>, vector<64x1xf32>
    %cst_10 = arith.constant dense<0.000000e+00> : vector<64xf32>
    %27 = vector.multi_reduction <add>, %25, %cst_10 [1] : vector<64x256xf32> to vector<64xf32>
    %28 = vector.shape_cast %27 : vector<64xf32> to vector<64x1xf32>
    %29 = arith.addf %26, %28 : vector<64x1xf32>
    %c0_11 = arith.constant 0 : index
    %c0_12 = arith.constant 0 : index
    %30 = vector.load %arg8[%c0_11, %c0_12] : memref<64x1xf32, #tpu.memory_space<vmem>>, vector<64x1xf32>
    tpu.vector_store %arg8[%c0_11, %c0_12], %29 {strides = array<i32>} : memref<64x1xf32, #tpu.memory_space<vmem>>, vector<64x1xf32>,
    %c0_13 = arith.constant 0 : index
    %c0_14 = arith.constant 0 : index
    %31 = vector.load %arg7[%c0_13, %c0_14] : memref<128x64xf32, #tpu.memory_space<vmem>>, vector<128x64xf32>
    %32 = arith.truncf %25 : vector<64x256xf32> to vector<64x256xbf16>
    %cst_15 = arith.constant dense<0.000000e+00> : vector<128x64xf32>
    %33 = tpu.matmul %5, %32, %cst_15 {dimension_numbers = #tpu.dot_dimension_numbers<[1], [1], [0], [0], [0, 0, 1, 0], [], []>} : vector<128x256xbf16>, vector<64x256xbf16>, vector<128x64xf32> -> vector<128x64xf32>
    %34 = arith.addf %31, %33 : vector<128x64xf32>
    %c0_16 = arith.constant 0 : index
    %c0_17 = arith.constant 0 : index
    %35 = vector.load %arg7[%c0_16, %c0_17] : memref<128x64xf32, #tpu.memory_space<vmem>>, vector<128x64xf32>
    tpu.vector_store %arg7[%c0_16, %c0_17], %34 {strides = array<i32>} : memref<128x64xf32, #tpu.memory_space<vmem>>, vector<128x64xf32>,
    %c3_i32 = arith.constant 3 : i32
    %36 = arith.cmpi eq, %arg1, %c3_i32 : i32
    %37 = arith.extui %36 : i1 to i32
    %c0_i32_18 = arith.constant 0 : i32
    %38 = arith.cmpi ne, %37, %c0_i32_18 : i32
    scf.if %38 {
      %c0_19 = arith.constant 0 : index
      %c0_20 = arith.constant 0 : index
      %39 = vector.load %arg8[%c0_19, %c0_20] : memref<64x1xf32, #tpu.memory_space<vmem>>, vector<64x1xf32>
      %c0_21 = arith.constant 0 : index
      %c0_22 = arith.constant 0 : index
      %40 = vector.load %arg4[%c0_21, %c0_22] : memref<64x128xf32, #tpu.memory_space<vmem>>, vector<64x128xf32>
      %c0_23 = arith.constant 0 : index
      %c0_24 = arith.constant 0 : index
      %41 = vector.load %arg7[%c0_23, %c0_24] : memref<128x64xf32, #tpu.memory_space<vmem>>, vector<128x64xf32>
      %c0_25 = arith.constant 0 : index
      %c0_26 = arith.constant 0 : index
      %42 = vector.load %arg5[%c0_25, %c0_26] : memref<128x128xf32, #tpu.memory_space<vmem>>, vector<128x128xf32>
      %cst_27 = arith.constant dense<0.000000e+00> : vector<64x128xf32>
      %43 = tpu.matmul %41, %42, %cst_27 {dimension_numbers = #tpu.dot_dimension_numbers<[0], [0], [1], [1], [0, 1, 1, 1], [], []>} : vector<128x64xf32>, vector<128x128xf32>, vector<64x128xf32> -> vector<64x128xf32>
      %44 = vector.broadcast %39 : vector<64x1xf32> to vector<64x128xf32>
      %45 = arith.mulf %40, %44 : vector<64x128xf32>
      %46 = arith.subf %43, %45 : vector<64x128xf32>
      %47 = arith.mulf %46, %46 : vector<64x128xf32>
      %cst_28 = arith.constant dense<0.000000e+00> : vector<64xf32>
      %48 = vector.multi_reduction <add>, %47, %cst_28 [1] : vector<64x128xf32> to vector<64xf32>
      %49 = vector.shape_cast %48 : vector<64xf32> to vector<64x1xf32>
      %50 = math.sqrt %49 : vector<64x1xf32>
      %cst_29 = arith.constant 9.99999996E-13 : f32
      %51 = vector.broadcast %cst_29 : f32 to vector<64x1xf32>
      %52 = arith.maximumf %50, %51 : vector<64x1xf32>
      %cst_30 = arith.constant 1.000000e+00 : f32
      %53 = vector.broadcast %cst_30 : f32 to vector<64x1xf32>
      %54 = arith.divf %53, %52 : vector<64x1xf32>
      %55 = arith.mulf %49, %54 : vector<64x1xf32>
      %56 = arith.mulf %55, %54 : vector<64x1xf32>
      %57 = vector.shape_cast %56 : vector<64x1xf32> to vector<1x64x1xf32>
      %cst_31 = arith.constant dense<0.000000e+00> : vector<1xf32>
      %58 = vector.multi_reduction <add>, %57, %cst_31 [1, 2] : vector<1x64x1xf32> to vector<1xf32>
      %59 = vector.shape_cast %58 : vector<1xf32> to vector<1x1x1xf32>
      %60 = vector.extract %59[0, 0, 0] : f32 from vector<1x1x1xf32>
      %61 = vector.broadcast %60 : f32 to vector<1x1xf32>
      %62 = math.sqrt %61 : vector<1x1xf32>
      %cst_32 = arith.constant 9.99999996E-13 : f32
      %63 = vector.broadcast %cst_32 : f32 to vector<1x1xf32>
      %64 = arith.maximumf %62, %63 : vector<1x1xf32>
      %cst_33 = arith.constant 1.000000e+00 : f32
      %65 = vector.broadcast %cst_33 : f32 to vector<1x1xf32>
      %66 = arith.divf %65, %64 : vector<1x1xf32>
      %67 = vector.broadcast %66 : vector<1x1xf32> to vector<64x1xf32>
      %68 = arith.mulf %54, %67 : vector<64x1xf32>
      %69 = vector.broadcast %68 : vector<64x1xf32> to vector<64x128xf32>
      %70 = arith.mulf %46, %69 : vector<64x128xf32>
      %c0_34 = arith.constant 0 : index
      %c0_35 = arith.constant 0 : index
      %c0_36 = arith.constant 0 : index
      %71 = vector.load %arg6[%c0_34, %c0_35, %c0_36] : memref<1x64x128xf32, #tpu.memory_space<vmem>>, vector<1x64x128xf32>
      %72 = vector.shape_cast %71 : vector<1x64x128xf32> to vector<64x128xf32>
      %73 = vector.shape_cast %70 : vector<64x128xf32> to vector<1x64x128xf32>
      tpu.vector_store %arg6[%c0_34, %c0_35, %c0_36], %73 {strides = array<i32>} : memref<1x64x128xf32, #tpu.memory_space<vmem>>, vector<1x64x128xf32>,
    } else {
    }
    return
  }
  func.func @transform_0(%arg0: i32, %arg1: i32) -> (i32, i32, i32) {
    %c0_i32 = arith.constant 0 : i32
    %c0_i32_0 = arith.constant 0 : i32
    return %arg0, %c0_i32, %arg1 : i32, i32, i32
  }
  func.func @transform_1(%arg0: i32, %arg1: i32) -> (i32, i32) {
    %c0_i32 = arith.constant 0 : i32
    %c0_i32_0 = arith.constant 0 : i32
    %c0_i32_1 = arith.constant 0 : i32
    return %c0_i32, %c0_i32_0 : i32, i32
  }
  func.func @transform_2(%arg0: i32, %arg1: i32) -> (i32, i32) {
    %c0_i32 = arith.constant 0 : i32
    %c0_i32_0 = arith.constant 0 : i32
    %c0_i32_1 = arith.constant 0 : i32
    return %c0_i32, %c0_i32_0 : i32, i32
  }
  func.func @transform_3(%arg0: i32, %arg1: i32) -> (i32, i32) {
    %c0_i32 = arith.constant 0 : i32
    %c0_i32_0 = arith.constant 0 : i32
    %c0_i32_1 = arith.constant 0 : i32
    return %c0_i32, %c0_i32_0 : i32, i32
  }
  func.func @transform_4(%arg0: i32, %arg1: i32) -> (i32, i32, i32) {
    %c0_i32 = arith.constant 0 : i32
    %c0_i32_0 = arith.constant 0 : i32
    %c0_i32_1 = arith.constant 0 : i32
    return %arg0, %c0_i32, %c0_i32_0 : i32, i32, i32
  }
}

</mosaic_0001>

<bundles_post_ra>
// kernel: tpu_custom_call.1
= control target key start
LH: loop header
LB: loop body
LE: loop exit
PB: predicated region body
PF: predicated region fallthrough
CT: control target
= control target key end

     0   :  { %s2798_s0 = inlined_call_operand.hbm [shape: f32[2,128,1024], index: 0, kind: input, shape index: {}]   ;;  %s2799_s1 = inlined_call_operand.hbm [shape: bf16[64,128], index: 1, kind: input, shape index: {}]   ;;  %s2800_s2 = inlined_call_operand.hbm [shape: f32[64,128], index: 2, kind: input, shape index: {}]   ;;  %s2801_s3 = inlined_call_operand.hbm [shape: f32[128,128], index: 3, kind: input, shape index: {}]   ;;  %s2802_s4 = inlined_call_operand.hbm [shape: f32[2,64,128], index: 4, kind: output, shape index: {}]  }
   0x1   :  { %2816 = sst [smem:[#allocation21_spill]] %s2799_s1 }
   0x2   :  { %2817 = sst [smem:[#allocation22_spill]] %s2800_s2 }
   0x3   :  { %2818 = sst [smem:[#allocation23_spill]] %s2802_s4 }
   0x4   :  { %9 = vsyncpa [#allocation5], 0 }
   0x5   :  { %11 = vsyncpa [#allocation5 + $0x1], 0 }
   0x6   :  { %12 = vsyncpa [#allocation8], 0 }
   0x7   :  { %13 = vsyncpa [#allocation11], 0 }
   0x8   :  { %14 = vsyncpa [#allocation6], 0 }
   0x9   :  { %16 = vsyncpa [#allocation6 + $0x1], 0  ;;  %s2052_s15 = smov 0   ;;  %s2054_s16 = smov 0  }
   0xa   :  { %s2056_s17 = smov 0   ;;  %s2058_s18 = smov 0  }
   0xb   :  { %s2060_s19 = smov 0   ;;  %s2062_s20 = smov 0  }
   0xc   :  { %s2064_s21 = smov 0   ;;  %s2066_s22 = smov 0  }
   0xd   :  { %s2068_s23 = smov 0   ;;  %s2070_s24 = smov 0  }
   0xe   :  { %s2072_s25 = smov 0  }
   0xf LB: > { %2819 = sst [smem:[#allocation17_spill]] %s1968_s15  ;;  %s1361_s26 = sadd.s32 4294967295, %s2008_s25   ;;  %s2008_s25 = sphi %s2072_s25, %s22_s25   ;;  %s2004_s24 = sphi %s2070_s24, %s2860_s24   ;;  %s2000_s23 = sphi %s2068_s23, %s2859_s23   ;;  %s1996_s22 = sphi %s2066_s22, %s2858_s22   ;;  %s1992_s21 = sphi %s2064_s21, %s2857_s21   ;;  %s1988_s20 = sphi %s2062_s20, %s2856_s20   ;;  %s1984_s19 = sphi %s2060_s19, %s2855_s19   ;;  %s1980_s18 = sphi %s2058_s18, %s2854_s18   ;;  %s1976_s17 = sphi %s2056_s17, %s2853_s17   ;;  %s1972_s16 = sphi %s2054_s16, %s2852_s16   ;;  %s1968_s15 = sphi %s2052_s15, %s2851_s15  }
  0x10   : > { %2820 = sst [smem:[#allocation18_spill]] %s2008_s25  ;;  %s1362_s27 = sadd.s32 4294967294, %s2008_s25  }
  0x11   : > { %p50_p0 = scmp.ne.s32.totalorder %s1988_s20, %s1984_s19  ;;  %p51_p1 = scmp.eq.s32.totalorder %s2008_s25, 0 }
  0x12   : > { %p56_p2 = scmp.ne.s32.totalorder %s1984_s19, %s1980_s18  ;;  %p2112_p3 = scmp.eq.s32.totalorder %s1361_s26, 0 }
  0x13   : > { %p2117_p4 = por %p51_p1, %p50_p0  ;;  %p142_p5 = scmp.ne.s32.totalorder %s1976_s17, %s1972_s16 }
  0x14   : > { %s2821_s29 = scalar_select %p2112_p3, 1, 0 }
  0x15   : > { %p2125_p6 = por %p2112_p3, %p56_p2  ;;  %p143_p7 = scmp.eq.s32.totalorder %s1361_s26, 7 }
  0x16   : > { %p148_p8 = scmp.ne.s32.totalorder %s1972_s16, %s1968_s15  ;;  %p149_p9 = scmp.eq.s32.totalorder %s1362_s27, 7 }
  0x17   : > { %s2823_s6 = scalar_select %p2125_p6, 1, 0 }
  0x18   : > { %p2131_p10 = por %p143_p7, %p142_p5  ;;  %p1363_p11 = scmp.ge.s32.totalorder %s2008_s25, 1 }
  0x19   : > { %p2136_p12 = por %p149_p9, %p148_p8  ;;  %p156_p13 = scmp.lt.s32.totalorder %s2008_s25, 9 }
  0x1a   : > { %s2824_s7 = scalar_select %p2131_p10, 1, 0 }
  0x1b   : > { %s2826_s8 = scalar_select %p2136_p12, 1, 0 }
  0x1c   : > { %2825 = sst [smem:[#allocation19_spill]] %s2824_s7  ;;  %p2141_p0 = pnand %p1363_p11, %p156_p13 }
  0x1d   : > { %2827 = sst [smem:[#allocation20_spill]] %s2826_s8  ;;  %s2010_s10 = smov [#allocation7]  }
  0x1e   : > { %s2828_s9 = scalar_select %p2141_p0, 1, 0 }
  0x1f   : > { %s168_s11 = sshll.u32 %s2010_s10, 4  ;;  %p1557_p1 = pneg %p2141_p0  ;;  %s2145_s11 = int_to_ptr.vmem [resolvable:$true] %s168_s11 }
  0x20   : > { %p1578_p2 = scmp.lt.s32.totalorder %s2008_s25, 8  ;;  %s2011_s14 = smov [#allocation9]  }
  0x21   : > { %p2152_p5 = pnand %p1557_p1, %p2112_p3  ;;  %s181_s18 = sshll.u32 %s2011_s14, 4  ;;  %s2162_s18 = int_to_ptr.vmem [resolvable:$true] %s181_s18 }
  0x22   : > { %p2158_p7 = pnand %p1578_p2, %p2117_p4  ;;  %s2831_s1 = sld [smem:[#allocation21_spill]] }
  0x23   : > { %p2172_p9 = pneg %p2152_p5 }
  0x24   : > { %s2830_s13 = scalar_select %p2158_p7, 1, 0 }
  0x28   : > { %s1764_s10 = scalar_lea.hbm %s2831_s1, 512 }
  0x29   : > { %p1765_p8 = scmp.ne.s32.totalorder %s2831_s1, %s1764_s10  ;;  %p1771_p13 = scmp.lt.u32.totalorder %s1764_s10, %s2831_s1 }
  0x2b   : > { %p1767_p4 = pnand %p2172_p9, %p1765_p8 }
  0x2d   : > { %p1768_p11 = pneg %p1767_p4 }
  0x2f   : > { %p1773_p1 = pnand %p1771_p13, %p1768_p11 }
  0x31   : > { %1776 = shalt.err (!%p1773_p1)
}
  0x32   : > { %s1777_s28 = scalar_lea.vmem %s2145_s11, 512  ;;  %p1785_p3 = scmp.lt.s32.totalorder %s2145_s11, %s2145_s11 }
  0x33   : > { %p1778_p2 = scmp.ne.s32.totalorder %s2145_s11, %s1777_s28  ;;  %p1786_p6 = scmp.lt.s32.totalorder %s1777_s28, %s1777_s28 }
  0x35   : > { %p1780_p12 = pnand %p1778_p2, %p2172_p9  ;;  %p1787_p8 = por %p1786_p6, %p1785_p3 }
  0x37   : > { %p1781_p10 = pneg %p1780_p12 }
  0x39   : > { %p1788_p4 = pnand %p1787_p8, %p1781_p10 }
  0x3b   : > { %1791 = shalt.err (!%p1788_p4)
}
  0x3c   : > { %s2012_s30 = smov 64   ;;  %s2013_s8 = smov 4  }
  0x3d   : > { %1560 = dma.hbm_to_vmem [thread:$0]  (!%p2152_p5), %s2831_s1, 512, %s2145_s11, [#allocation8], %s2012_s30, %s2012_s30, %s2013_s8  }
  0x3e   : > { %s2833_s2 = sld [smem:[#allocation22_spill]] }
  0x44   : > { %s1792_s15 = scalar_lea.hbm %s2833_s2, 1024 }
  0x45   : > { %p1793_p3 = scmp.ne.s32.totalorder %s2833_s2, %s1792_s15  ;;  %p1799_p12 = scmp.lt.u32.totalorder %s1792_s15, %s2833_s2 }
  0x47   : > { %p1795_p6 = pnand %p1793_p3, %p2172_p9 }
  0x49   : > { %p1796_p10 = pneg %p1795_p6 }
  0x4b   : > { %p1801_p11 = pnand %p1799_p12, %p1796_p10 }
  0x4d   : > { %1804 = shalt.err (!%p1801_p11)
}
  0x4e   : > { %s1805_s11 = scalar_lea.vmem %s2162_s18, 1024  ;;  %p1813_p8 = scmp.lt.s32.totalorder %s2162_s18, %s2162_s18 }
  0x4f   : > { %p1806_p13 = scmp.ne.s32.totalorder %s2162_s18, %s1805_s11  ;;  %p1814_p4 = scmp.lt.s32.totalorder %s1805_s11, %s1805_s11 }
  0x51   : > { %p1808_p1 = pnand %p1806_p13, %p2172_p9  ;;  %p1815_p3 = por %p1814_p4, %p1813_p8 }
  0x53   : > { %p1809_p2 = pneg %p1808_p1 }
  0x55   : > { %p1816_p6 = pnand %p1815_p3, %p1809_p2 }
  0x57   : > { %1819 = shalt.err (!%p1816_p6)
}
  0x58   : > { %s2014_s4 = smov 128   ;;  %s2015_s15 = smov 8  }
  0x59   : > { %1563 = dma.hbm_to_vmem [thread:$0]  (!%p2152_p5), %s2833_s2, 1024, %s2162_s18, [#allocation8], %s2014_s4, %s2014_s4, %s2015_s15  }
  0x5a   : > { %s2016_s30 = smov [#allocation10]   ;;  %s1820_s10 = scalar_lea.hbm %s2801_s3, 2048 }
  0x5b   : > { %s194_s8 = sshll.u32 %s2016_s30, 4  ;;  %p1821_p10 = scmp.ne.s32.totalorder %s2801_s3, %s1820_s10  ;;  %s195_s8 = int_to_ptr.vmem [resolvable:$true] %s194_s8 }
  0x5c   : > { %p1827_p13 = scmp.lt.u32.totalorder %s1820_s10, %s2801_s3 }
  0x5d   : > { %p1823_p12 = pnand %p1821_p10, %p2172_p9 }
  0x5f   : > { %p1824_p11 = pneg %p1823_p12 }
  0x61   : > { %p1829_p1 = pnand %p1827_p13, %p1824_p11 }
  0x63   : > { %1832 = shalt.err (!%p1829_p1)
}
  0x64   : > { %s1833_s18 = scalar_lea.vmem %s195_s8, 2048  ;;  %p1841_p3 = scmp.lt.s32.totalorder %s195_s8, %s195_s8 }
  0x65   : > { %p1834_p2 = scmp.ne.s32.totalorder %s195_s8, %s1833_s18  ;;  %p1842_p6 = scmp.lt.s32.totalorder %s1833_s18, %s1833_s18 }
  0x67   : > { %p1836_p8 = pnand %p1834_p2, %p2172_p9  ;;  %p1843_p0 = por %p1842_p6, %p1841_p3 }
  0x69   : > { %p1837_p4 = pneg %p1836_p8 }
  0x6b   : > { %p1844_p7 = pnand %p1843_p0, %p1837_p4 }
  0x6d   : > { %1847 = shalt.err (!%p1844_p7)
}
  0x6e   : > { %1566 = dma.hbm_to_vmem [thread:$0]  (!%p2152_p5), %s2801_s3, 2048, %s195_s8, [#allocation11], %s2014_s4, %s2014_s4, %s2015_s15  }
  0x6f   : > { %s31_s1 = sadd.s32 1, %s2000_s23  ;;  %s34_s5 = sadd.s32 1, %s2004_s24 }
  0x70   : > { %p32_p9 = scmp.ge.s32.totalorder %s31_s1, 4  ;;  %s208_s30 = sand.u32 1, %s1988_s20  }
  0x71   : > { %s1368_s26 = sshll.u32 %s208_s30, 8  ;;  %s1369_s27 = sshll.u32 %s2000_s23, 1 }
  0x72   : > { %s2862_s1 = smov (%p32_p9, %s31_s1), 0  ;;  %s2864_s5 = smov (!%p32_p9, %s34_s5), %s2004_s24 }
  0x73   : > { %s39_s12 = ssub.s32 %s2000_s23, %s2862_s1  ;;  %p36_p0 = scmp.ge.s32.totalorder %s2864_s5, 2 }
  0x74   : > { %s1370_s10 = sshll.u32 %s2004_s24, 7  ;;  %s212_s14 = scalar_lea.vmem [#allocation4], %s1368_s26 }
  0x75   : > { %s221_s4 = sshll.u32 %s212_s14, 4  ;;  %s2866_s5 = smov (%p36_p0, %s2864_s5), 0  ;;  %s2246_s4 = int_to_ptr.vmem [resolvable:$true] %s221_s4 }
  0x76   : > { %s218_s15 = sadd.s32 %s1370_s10, %s1369_s27  ;;  %s38_s8 = ssub.s32 %s2004_s24, %s2866_s5 }
  0x77   : > { %s1371_s28 = sshll.u32 %s218_s15, 7  ;;  %s40_s11 = sor.u32 %s39_s12, %s38_s8 }
  0x78   : > { %p130_p5 = scmp.eq.s32.totalorder %s38_s8, 0  ;;  %p41_p7 = scmp.eq.s32.totalorder %s40_s11, 0 }
  0x79   : > { %s2253_s7 = scalar_lea.hbm %s2798_s0, %s1371_s28  ;;  %s2834_s26 = sadd.s32 1, %s1976_s17 }
  0x7a   : > { %s2258_s14 = scalar_select %p130_p5, %s1976_s17, %s2834_s26  }
  0x7b   : > { %s2835_s27 = sadd.s32 1, %s1988_s20  ;;  %s2265_s2 = scalar_lea.sflag [#allocation5], %s208_s30 }
  0x7c   : > { %s2263_s10 = scalar_select %p41_p7, %s1988_s20, %s2835_s27  }
  0x7d   : > { %s1848_s12 = scalar_lea.hbm %s2253_s7, 4096  ;;  %p2836_p12 = scmp.ne.s32.totalorder %s2830_s13, 0 }
  0x7e   : > { %p1849_p10 = scmp.ne.s32.totalorder %s2253_s7, %s1848_s12  ;;  %s1853_s28 = scalar_lea.hbm %s2798_s0, 32768 }
  0x7f   : > { %p1850_p11 = pneg %p2836_p12  ;;  %p1854_p2 = scmp.lt.u32.totalorder %s2253_s7, %s2798_s0 }
  0x80   : > { %p1855_p8 = scmp.lt.u32.totalorder %s1853_s28, %s1848_s12  ;;  %p1857_p3 = scmp.lt.u32.totalorder %s1848_s12, %s2253_s7 }
  0x81   : > { %p1851_p13 = pnand %p1850_p11, %p1849_p10 }
  0x82   : > { %p1856_p4 = por %p1855_p8, %p1854_p2 }
  0x83   : > { %p1852_p1 = pneg %p1851_p13 }
  0x84   : > { %p1858_p6 = por %p1857_p3, %p1856_p4 }
  0x86   : > { %p1859_p9 = pnand %p1858_p6, %p1852_p1 }
  0x88   : > { %1862 = shalt.err (!%p1859_p9)
}
  0x89   : > { %s1863_s30 = scalar_lea.vmem %s2246_s4, 4096  ;;  %s2017_s25 = smov [#allocation4]  }
  0x8a   : > { %p1864_p0 = scmp.ne.s32.totalorder %s2246_s4, %s1863_s30  ;;  %s1868_s26 = sshll.u32 %s2017_s25, 4  ;;  %s1869_s26 = int_to_ptr.vmem [resolvable:$false] %s1868_s26 }
  0x8b   : > { %s1870_s27 = scalar_lea.vmem %s1869_s26, 8192  ;;  %p1871_p10 = scmp.lt.s32.totalorder %s2246_s4, %s1869_s26 }
  0x8c   : > { %p1866_p5 = pnand %p1864_p0, %p1850_p11  ;;  %p1872_p13 = scmp.lt.s32.totalorder %s1870_s27, %s1863_s30 }
  0x8e   : > { %p1867_p7 = pneg %p1866_p5  ;;  %p1873_p2 = por %p1872_p13, %p1871_p10 }
  0x90   : > { %p1874_p8 = pnand %p1873_p2, %p1867_p7 }
  0x92   : > { %1877 = shalt.err (!%p1874_p8)
}
  0x93   : > { %s2018_s12 = smov 1024   ;;  %s2019_s15 = smov 256  }
  0x94   : > { %s2020_s8 = smov 16   ;;  %p2837_p11 = scmp.ne.s32.totalorder %s2828_s9, 0 }
  0x95   : > { %1570 = dma.hbm_to_vmem [thread:$0]  (!%p2836_p12), %s2253_s7, 4096, %s2246_s4, %s2265_s2, %s2018_s12, %s2019_s15, %s2020_s8  }
  0x96   : > { %233 = sbr.rel (%p2837_p11) target bundleno = 1608 (0x648), region = 36  ;;  %s235_s28 = sand.u32 (!%p2837_p11), 1, %s1984_s19  }
  0x97   : > { %s1373_s11 = sshll.u32 (!%p2837_p11), %s235_s28, 8  ;;  %s236_s18 = scalar_lea.sflag (!%p2837_p11), [#allocation5], %s235_s28 }
  0x98   : > { %s2296_s30 = scalar_lea.vmem (!%p2837_p11), [#allocation4], %s1373_s11  ;;  %p2838_p1 = scmp.ne.s32.totalorder (!%p2837_p11), %s2823_s6, 0 }
  0x9d   : > { %1951 = dma.done.wait (%p2838_p1), %s236_s18, 4096  }
  0x9e   : > { %1953 = vsyncadd (%p2838_p1), %s236_s18, 4294963200  ;;  %p2839_p4 = scmp.ne.s32.totalorder %s2821_s29, 0 }
  0xa0   : > { %1955 = dma.done.wait (%p2839_p4), [#allocation8], 1536  }
  0xa1   : > { %1957 = vsyncadd (%p2839_p4), [#allocation8], 4294965760 }
  0xa2   : > { %1959 = dma.done.wait (%p2839_p4), [#allocation11], 2048  }
  0xa3   : > { %1961 = vsyncadd (%p2839_p4), [#allocation11], 4294965248  ;;  %s273_s2 = sand.u32 1, %s1972_s16   ;;  %p1378_p12 = scmp.ne.s32.totalorder %s1992_s21, 0 }
  0xa4   : > { %s1377_s9 = sshll.u32 %s273_s2, 6  ;;  %vm282_vm0 = vcmask (!%p1378_p12), 523264   ;;  %vm299_vm1 = vcmask (!%p1378_p12), 7168   ;;  %v2021_v0 = vmov (!%p1378_p12), 0.0  }
  0xa5   : > { %s2313_s13 = scalar_lea.vmem [#allocation12], %s1377_s9  ;;  %281 = sbr.rel (%p1378_p12) target bundleno = 177 (0xb1), region = 56  ;;  %283 = vst.msk [vmem:[#allocation2] sm:$0xff] (!%p1378_p12), %vm282_vm0, %v2021_v0  ;;  %284 = vst.msk [vmem:[#allocation2 + $0x8] sm:$0xff] (!%p1378_p12), %vm282_vm0, %v2021_v0 }
  0xa6   : > { %285 = vst.msk [vmem:[#allocation2 + $0x10] sm:$0xff] (!%p1378_p12), %vm282_vm0, %v2021_v0  ;;  %286 = vst.msk [vmem:[#allocation2 + $0x18] sm:$0xff] (!%p1378_p12), %vm282_vm0, %v2021_v0 }
  0xa7   : > { %287 = vst.msk [vmem:[#allocation2 + $0x20] sm:$0xff] (!%p1378_p12), %vm282_vm0, %v2021_v0  ;;  %288 = vst.msk [vmem:[#allocation2 + $0x28] sm:$0xff] (!%p1378_p12), %vm282_vm0, %v2021_v0 }
  0xa8   : > { %289 = vst.msk [vmem:[#allocation2 + $0x30] sm:$0xff] (!%p1378_p12), %vm282_vm0, %v2021_v0  ;;  %290 = vst.msk [vmem:[#allocation2 + $0x38] sm:$0xff] (!%p1378_p12), %vm282_vm0, %v2021_v0 }
  0xa9   : > { %291 = vst.msk [vmem:[#allocation2 + $0x40] sm:$0xff] (!%p1378_p12), %vm282_vm0, %v2021_v0  ;;  %292 = vst.msk [vmem:[#allocation2 + $0x48] sm:$0xff] (!%p1378_p12), %vm282_vm0, %v2021_v0 }
  0xaa   : > { %293 = vst.msk [vmem:[#allocation2 + $0x50] sm:$0xff] (!%p1378_p12), %vm282_vm0, %v2021_v0  ;;  %294 = vst.msk [vmem:[#allocation2 + $0x58] sm:$0xff] (!%p1378_p12), %vm282_vm0, %v2021_v0 }
  0xab   : > { %295 = vst.msk [vmem:[#allocation2 + $0x60] sm:$0xff] (!%p1378_p12), %vm282_vm0, %v2021_v0  ;;  %296 = vst.msk [vmem:[#allocation2 + $0x68] sm:$0xff] (!%p1378_p12), %vm282_vm0, %v2021_v0 }
  0xac   : > { %297 = vst.msk [vmem:[#allocation2 + $0x70] sm:$0xff] %vm282_vm0, %v2021_v0  ;;  %298 = vst.msk [vmem:[#allocation2 + $0x78] sm:$0xff] %vm282_vm0, %v2021_v0 }
  0xad   : > { %300 = vst.msk [vmem:[#allocation3] sm:$0xff] %vm299_vm1, %v2021_v0  ;;  %301 = vst.msk [vmem:[#allocation3 + $0x8] sm:$0xff] %vm299_vm1, %v2021_v0 }
  0xae   : > { %302 = vst.msk [vmem:[#allocation3 + $0x10] sm:$0xff] %vm299_vm1, %v2021_v0  ;;  %303 = vst.msk [vmem:[#allocation3 + $0x18] sm:$0xff] %vm299_vm1, %v2021_v0 }
  0xaf   : > { %304 = vst.msk [vmem:[#allocation3 + $0x20] sm:$0xff] %vm299_vm1, %v2021_v0  ;;  %305 = vst.msk [vmem:[#allocation3 + $0x28] sm:$0xff] %vm299_vm1, %v2021_v0 }
  0xb0   : > { %306 = vst.msk [vmem:[#allocation3 + $0x30] sm:$0xff] %vm299_vm1, %v2021_v0  ;;  %307 = vst.msk [vmem:[#allocation3 + $0x38] sm:$0xff] %vm299_vm1, %v2021_v0 }
  0xb1 PF: > { %v309_v1 = vld [vmem:[%s2296_s30 + $0x8] sm:$0xff]  ;;  %v311_v2 = vld [vmem:[%s2296_s30 + $0x18] sm:$0xff]  ;;  %v308_v3 = vld [vmem:[%s2296_s30] sm:$0xff]  ;;  %v2022_v8 = vmov 0   ;;  %s1383_s29 = sshll.u32 %s1992_s21, 8  ;;  %vm644_vm6 = vcmask 7168  }
  0xb2   : > { %v2343_v4 = vpack.c.bf16 %v311_v2, %v309_v1  ;;  %v310_v5 = vld [vmem:[%s2296_s30 + $0x10] sm:$0xff]  ;;  %v313_v6 = vld [vmem:[%s2296_s30 + $0x28] sm:$0xff]  ;;  %v315_v7 = vld [vmem:[%s2296_s30 + $0x38] sm:$0xff]  ;;  %420 = vmatprep.mubr.bf16.mxu0 %v2022_v8  ;;  %vm790_vm7 = vcmask 523264   ;;  %p1408_p3 = scmp.ne.s32.totalorder %s1992_s21, 3 }
  0xb3   : > { %v2349_v9 = vpack.c.bf16 %v310_v5, %v308_v3  ;;  %v2351_v10 = vpack.c.bf16 %v315_v7, %v313_v6  ;;  %v312_v11 = vld [vmem:[%s2296_s30 + $0x20] sm:$0xff]  ;;  %v314_v12 = vld [vmem:[%s2296_s30 + $0x30] sm:$0xff]  ;;  %v317_v13 = vld [vmem:[%s2296_s30 + $0x48] sm:$0xff] }
  0xb4   : > { %388 = vmatprep.subr.bf16.mxu0 %v2343_v4  ;;  %v319_v14 = vld [vmem:[%s2296_s30 + $0x58] sm:$0xff]  ;;  %v2359_v15 = vpack.c.bf16 %v314_v12, %v312_v11  ;;  %v316_v17 = vld [vmem:[%s2296_s30 + $0x40] sm:$0xff]  ;;  %v318_v18 = vld [vmem:[%s2296_s30 + $0x50] sm:$0xff] }
  0xb5   : > { %389 = vmatpush1.bf16.msra.mxu0 %v2349_v9  ;;  %v345_v16 = vpack.c.bf16 %v319_v14, %v317_v13  ;;  %v321_v19 = vld [vmem:[%s2296_s30 + $0x68] sm:$0xff]  ;;  %v323_v20 = vld [vmem:[%s2296_s30 + $0x78] sm:$0xff]  ;;  %v2367_v21 = vpack.c.bf16 %v318_v18, %v316_v17  ;;  %v320_v23 = vld [vmem:[%s2296_s30 + $0x60] sm:$0xff] }
  0xb6   : > { %390 = vmatprep.subr.bf16.mxu0 %v2351_v10  ;;  %v2369_v22 = vpack.c.bf16 %v323_v20, %v321_v19  ;;  %v322_v24 = vld [vmem:[%s2296_s30 + $0x70] sm:$0xff]  ;;  %v325_v25 = vld [vmem:[%s2296_s30 + $0x88] sm:$0xff]  ;;  %v327_v26 = vld [vmem:[%s2296_s30 + $0x98] sm:$0xff] }
  0xb7   : > { %725 = vmatprep.mubr.bf16.mxu1 %v345_v16  ;;  %v2376_v27 = vpack.c.bf16 %v322_v24, %v320_v23  ;;  %v324_v28 = vld [vmem:[%s2296_s30 + $0x80] sm:$0xff]  ;;  %v2380_v29 = vpack.c.bf16 %v327_v26, %v325_v25  ;;  %v326_v30 = vld [vmem:[%s2296_s30 + $0x90] sm:$0xff]  ;;  %v329_v31 = vld [vmem:[%s2296_s30 + $0xa8] sm:$0xff] }
  0xb8   : > { %v331_v32 = vld [vmem:[%s2296_s30 + $0xb8] sm:$0xff]  ;;  %v2386_v33 = vpack.c.bf16 %v326_v30, %v324_v28  ;;  %v328_v35 = vld [vmem:[%s2296_s30 + $0xa0] sm:$0xff]  ;;  %v330_v36 = vld [vmem:[%s2296_s30 + $0xb0] sm:$0xff] }
  0xb9   : > { %391 = vmatpush1.bf16.msra.mxu0 %v2359_v15  ;;  %v2389_v34 = vpack.c.bf16 %v331_v32, %v329_v31  ;;  %v333_v37 = vld [vmem:[%s2296_s30 + $0xc8] sm:$0xff]  ;;  %v335_v38 = vld [vmem:[%s2296_s30 + $0xd8] sm:$0xff]  ;;  %v2396_v39 = vpack.c.bf16 %v330_v36, %v328_v35  ;;  %v332_v41 = vld [vmem:[%s2296_s30 + $0xc0] sm:$0xff] }
  0xba   : > { %392 = vmatprep.subr.bf16.mxu0 %v345_v16  ;;  %v2399_v40 = vpack.c.bf16 %v335_v38, %v333_v37  ;;  %v334_v42 = vld [vmem:[%s2296_s30 + $0xd0] sm:$0xff]  ;;  %v337_v43 = vld [vmem:[%s2296_s30 + $0xe8] sm:$0xff]  ;;  %v339_v44 = vld [vmem:[%s2296_s30 + $0xf8] sm:$0xff] }
  0xbb   : > { %v2406_v45 = vpack.c.bf16 %v334_v42, %v332_v41  ;;  %v2409_v46 = vpack.c.bf16 %v339_v44, %v337_v43  ;;  %v336_v47 = vld [vmem:[%s2296_s30 + $0xe0] sm:$0xff]  ;;  %v338_v48 = vld [vmem:[%s2296_s30 + $0xf0] sm:$0xff]  ;;  %v1687_v51 = vld [vmem:[#allocation7 + $0x8] sm:$0xff]  }
  0xbc   : > { %v2414_v49 = vpack.c.bf16 %v338_v48, %v336_v47  ;;  %v1686_v50 = vld [vmem:[#allocation7] sm:$0xff]   ;;  %v1688_v52 = vld [vmem:[#allocation7 + $0x10] sm:$0xff]   ;;  %v1689_v53 = vld [vmem:[#allocation7 + $0x18] sm:$0xff]  }
  0xbd   : > { %393 = vmatpush1.bf16.msra.mxu0 %v2367_v21 }
  0xbe   : > { %394 = vmatprep.subr.bf16.mxu0 %v2369_v22 }
  0xc1   : > { %395 = vmatpush1.bf16.msra.mxu0 %v2376_v27 }
  0xc2   : > { %396 = vmatprep.subr.bf16.mxu0 %v2380_v29 }
  0xc5   : > { %397 = vmatpush1.bf16.msra.mxu0 %v2386_v33 }
  0xc6   : > { %398 = vmatprep.subr.bf16.mxu0 %v2389_v34 }
  0xc9   : > { %399 = vmatpush1.bf16.msra.mxu0 %v2396_v39 }
  0xca   : > { %400 = vmatprep.subr.bf16.mxu0 %v2399_v40 }
  0xcd   : > { %401 = vmatpush1.bf16.msra.mxu0 %v2406_v45 }
  0xce   : > { %402 = vmatprep.subr.bf16.mxu0 %v2409_v46 }
  0xd1   : > { %403 = vmatpush1.bf16.msra.mxu0 %v2414_v49 }
  0xd4   : > { %421 = vmatmul.mubr.bf16.vlgmr.msra.gmra.mrb[0].mxu0 %v1686_v50 }
  0xd5   : > { %430 = vmatprep.mubr.bf16.mxu0 %v2022_v8 }
  0xdc   : > { %431 = vmatmul.mubr.bf16.gmra.mrb[4].mxu0 %v1687_v51 }
  0xdd   : > { %440 = vmatprep.mubr.bf16.mxu0 %v2022_v8 }
  0xe4   : > { %441 = vmatmul.mubr.bf16.gmra.mrb[8].mxu0 %v1688_v52 }
  0xe5   : > { %450 = vmatprep.mubr.bf16.mxu0 %v2022_v8 }
  0xec   : > { %451 = vmatmul.mubr.bf16.gmra.mrb[12].mxu0 %v1689_v53 }
  0xed   : > { %709 = vmatprep.mubr.bf16.mxu0 %v2343_v4 }
 0x1a7   : > { %v422_v54 = vpop.f32.mrb[0].mxu0 }
 0x1a8   : > { %v2422_v55 = vpop.f32.mrb[1].mxu0 }
 0x1a9   : > { %v426_v56 = vpop.f32.mrb[2].mxu0 }
 0x1aa   : > { %v2424_v57 = vpop.f32.mrb[3].mxu0 }
 0x1af   : > { %v432_v58 = vpop.f32.mrb[4].mxu0 }
 0x1b0   : > { %v461_v59 = vmax.f32 %v422_v54, %v432_v58  ;;  %v2426_v60 = vpop.f32.mrb[5].mxu0 }
 0x1b1   : > { %v474_v61 = vmax.f32 %v2422_v55, %v2426_v60  ;;  %v436_v62 = vpop.f32.mrb[6].mxu0 }
 0x1b2   : > { %v462_v63 = vmax.f32 %v426_v56, %v436_v62  ;;  %v2430_v0 = vpop.f32.mrb[7].mxu0 }
 0x1b3   : > { %v475_v1 = vmax.f32 %v2424_v57, %v2430_v0 }
 0x1b7   : > { %v442_v2 = vpop.f32.mrb[8].mxu0 }
 0x1b8   : > { %v463_v3 = vmax.f32 %v461_v59, %v442_v2  ;;  %v2434_v4 = vpop.f32.mrb[9].mxu0 }
 0x1b9   : > { %v476_v5 = vmax.f32 %v474_v61, %v2434_v4  ;;  %v446_v6 = vpop.f32.mrb[10].mxu0 }
 0x1ba   : > { %v464_v7 = vmax.f32 %v462_v63, %v446_v6  ;;  %v2437_v8 = vpop.f32.mrb[11].mxu0 }
 0x1bb   : > { %v477_v11 = vmax.f32 %v475_v1, %v2437_v8 }
 0x1bf   : > { %v452_v12 = vpop.f32.mrb[12].mxu0 }
 0x1c0   : > { %v465_v13 = vmax.f32 %v463_v3, %v452_v12  ;;  %v2440_v14 = vpop.f32.mrb[13].mxu0 }
 0x1c1   : > { %v478_v16 = vmax.f32 %v476_v5, %v2440_v14  ;;  %v456_v17 = vpop.f32.mrb[14].mxu0 }
 0x1c2   : > { %v466_v18 = vmax.f32 %v464_v7, %v456_v17  ;;  %v2443_v19 = vpop.f32.mrb[15].mxu0 }
 0x1c3   : > { %v479_v20 = vmax.f32 %v477_v11, %v2443_v19 }
 0x1c4   : > { %v467_v23 = vmax.f32 %v465_v13, %v466_v18 }
 0x1c5   : > { %v480_v24 = vmax.f32 %v478_v16, %v479_v20 }
 0x1c6   : > { %v468_v25 = vrot.slane %v467_v23, 4 }
 0x1c7   : > { %v481_v26 = vrot.slane %v480_v24, 4 }
 0x1c8   : > { %v469_v28 = vmax.f32 %v467_v23, %v468_v25 }
 0x1c9   : > { %v482_v30 = vmax.f32 %v480_v24, %v481_v26 }
 0x1ca   : > { %v470_v31 = vrot.slane %v469_v28, 2 }
 0x1cb   : > { %v483_v32 = vrot.slane %v482_v30, 2 }
 0x1cc   : > { %v471_v35 = vmax.f32 %v469_v28, %v470_v31 }
 0x1cd   : > { %v484_v36 = vmax.f32 %v482_v30, %v483_v32 }
 0x1ce   : > { %v472_v37 = vrot.slane %v471_v35, 1 }
 0x1cf   : > { %v485_v38 = vrot.slane %v484_v36, 1 }
 0x1d0   : > { %v473_v41 = vmax.f32 %v471_v35, %v472_v37 }
 0x1d1   : > { %v486_v42 = vmax.f32 %v484_v36, %v485_v38 }
 0x1d2   : > { %v487_v43 = vsub.f32 %v422_v54, %v473_v41  ;;  %v489_v44 = vsub.f32 %v426_v56, %v473_v41  ;;  %v491_v47 = vsub.f32 %v432_v58, %v473_v41  ;;  %v493_v48 = vsub.f32 %v436_v62, %v473_v41 }
 0x1d3   : > { %v495_v50 = vsub.f32 %v442_v2, %v473_v41  ;;  %v497_v51 = vsub.f32 %v446_v6, %v473_v41  ;;  %v499_v52 = vsub.f32 %v452_v12, %v473_v41  ;;  %v501_v53 = vsub.f32 %v456_v17, %v473_v41 }
 0x1d4   : > { %v503_v59 = vmul.f32 1.442695, %v487_v43  ;;  %v507_v61 = vmul.f32 1.442695, %v489_v44  ;;  %v488_v63 = vsub.f32 %v2422_v55, %v486_v42  ;;  %v511_v1 = vmul.f32 1.442695, %v491_v47 }
 0x1d5   : > { %v490_v3 = vsub.f32 %v2424_v57, %v486_v42  ;;  %v515_v5 = vmul.f32 1.442695, %v493_v48  ;;  %v492_v7 = vsub.f32 %v2426_v60, %v486_v42  ;;  %v494_v54 = vsub.f32 %v2430_v0, %v486_v42 }
 0x1d6   : > { %1690 = vpow2.f32 %v503_v59  ;;  %v496_v56 = vsub.f32 %v2434_v4, %v486_v42  ;;  %v498_v58 = vsub.f32 %v2437_v8, %v486_v42  ;;  %v519_v62 = vmul.f32 1.442695, %v495_v50 }
 0x1d7   : > { %1692 = vpow2.f32 %v507_v61  ;;  %v500_v2 = vsub.f32 %v2440_v14, %v486_v42  ;;  %v502_v6 = vsub.f32 %v2443_v19, %v486_v42  ;;  %v523_v55 = vmul.f32 1.442695, %v497_v51 }
 0x1d8   : > { %1694 = vpow2.f32 %v511_v1  ;;  %v505_v11 = vmul.f32 1.442695, %v488_v63  ;;  %v509_v57 = vmul.f32 1.442695, %v490_v3  ;;  %v527_v12 = vmul.f32 1.442695, %v499_v52 }
 0x1d9   : > { %1696 = vpow2.f32 %v515_v5  ;;  %v513_v60 = vmul.f32 1.442695, %v492_v7  ;;  %v531_v13 = vmul.f32 1.442695, %v501_v53  ;;  %v517_v0 = vmul.f32 1.442695, %v494_v54 }
 0x1da   : > { %1698 = vpow2.f32 %v519_v62  ;;  %v521_v14 = vmul.f32 1.442695, %v496_v56  ;;  %v525_v18 = vmul.f32 1.442695, %v498_v58  ;;  %v529_v23 = vmul.f32 1.442695, %v500_v2 }
 0x1db   : > { %1700 = vpow2.f32 %v523_v55  ;;  %v533_v28 = vmul.f32 1.442695, %v502_v6  ;;  %v580_v6 = vlaneseq }
 0x1dc   : > { %1702 = vpow2.f32 %v505_v11 }
 0x1dd   : > { %1704 = vpow2.f32 %v509_v57  ;;  %v581_v57 = vand.u32 127, %v580_v6 }
 0x1de   : > { %1706 = vpow2.f32 %v527_v12 }
 0x1df   : > { %1708 = vpow2.f32 %v513_v60 }
 0x1e0   : > { %v2454_v4 = vpop.eup %1690  ;;  %1710 = vpow2.f32 %v531_v13  ;;  %v582_v13 = vadd.s32 128, %v581_v57 }
 0x1e1   : > { %v2456_v8 = vpop.eup %1692  ;;  %1712 = vpow2.f32 %v517_v0  ;;  %v583_v0 = vstv %s1383_s29 }
 0x1e2   : > { %v535_v16 = vadd.f32 %v2456_v8, %v2454_v4  ;;  %v1695_v17 = vpop.eup %1694  ;;  %1714 = vpow2.f32 %v521_v14 }
 0x1e3   : > { %v1697_v20 = vpop.eup %1696  ;;  %1716 = vpow2.f32 %v525_v18  ;;  %v584_v18 = vadd.s32 %v583_v0, %v581_v57 }
 0x1e4   : > { %v536_v19 = vadd.f32 %v1695_v17, %v535_v16  ;;  %v1699_v24 = vpop.eup %1698  ;;  %1718 = vpow2.f32 %v529_v23  ;;  %v585_v16 = vadd.s32 %v583_v0, %v582_v13 }
 0x1e5   : > { %v1701_v26 = vpop.eup %1700  ;;  %1720 = vpow2.f32 %v533_v28  ;;  %vm586_vm2 = vcmp.lt.s32.totalorder %v584_v18, 1000 }
 0x1e6   : > { %v537_v25 = vadd.f32 %v1697_v20, %v536_v19  ;;  %v2460_v30 = vpop.eup %1702  ;;  %vm587_vm3 = vcmp.lt.s32.totalorder %v585_v16, 1000  ;;  %vm2494_vm5 = vmpackc.low %vm586_vm2, %vm586_vm2 }
 0x1e7   : > { %v2462_v32 = vpop.eup %1704  ;;  %vm2487_vm4 = vmpackc.low %vm587_vm3, %vm587_vm3 }
 0x1e8   : > { %v538_v31 = vadd.f32 %v1699_v24, %v537_v25  ;;  %v1707_v35 = vpop.eup %1706  ;;  %v548_v37 = vadd.f32 %v2462_v32, %v2460_v30 }
 0x1e9   : > { %v2466_v38 = vpop.eup %1708 }
 0x1ea   : > { %v539_v36 = vadd.f32 %v1701_v26, %v538_v31  ;;  %v1711_v41 = vpop.eup %1710  ;;  %v549_v43 = vadd.f32 %v2466_v38, %v548_v37 }
 0x1eb   : > { %v1713_v44 = vpop.eup %1712 }
 0x1ec   : > { %v540_v42 = vadd.f32 %v1707_v35, %v539_v36  ;;  %v550_v48 = vadd.f32 %v1713_v44, %v549_v43  ;;  %v1715_v50 = vpop.eup %1714 }
 0x1ed   : > { %v1717_v53 = vpop.eup %1716 }
 0x1ee   : > { %v541_v47 = vadd.f32 %v1711_v41, %v540_v42  ;;  %v551_v52 = vadd.f32 %v1715_v50, %v550_v48  ;;  %v1719_v63 = vpop.eup %1718 }
 0x1ef   : > { %v1721_v5 = vpop.eup %1720 }
 0x1f0   : > { %v542_v51 = vrot.slane %v541_v47, 4  ;;  %v552_v61 = vadd.f32 %v1717_v53, %v551_v52 }
 0x1f2   : > { %v543_v59 = vadd.f32 %v542_v51, %v541_v47  ;;  %v553_v3 = vadd.f32 %v1719_v63, %v552_v61 }
 0x1f4   : > { %v544_v1 = vrot.slane %v543_v59, 2  ;;  %v554_v54 = vadd.f32 %v1721_v5, %v553_v3 }
 0x1f6   : > { %v545_v7 = vadd.f32 %v544_v1, %v543_v59  ;;  %v555_v58 = vrot.slane %v554_v54, 4 }
 0x1f8   : > { %v546_v56 = vrot.slane %v545_v7, 1  ;;  %v556_v2 = vadd.f32 %v555_v58, %v554_v54 }
 0x1fa   : > { %v547_v62 = vadd.f32 %v546_v56, %v545_v7  ;;  %v557_v55 = vrot.slane %v556_v2, 2 }
 0x1fc   : > { %1722 = vrcp.f32 %v547_v62  ;;  %v558_v11 = vadd.f32 %v557_v55, %v556_v2 }
 0x1fe   : > { %v559_v12 = vrot.slane %v558_v11, 1 }
 0x200   : > { %v560_v60 = vadd.f32 %v559_v12, %v558_v11 }
 0x202   : > { %1724 = vrcp.f32 %v560_v60 }
 0x206   : > { %v1723_v14 = vpop.eup %1722 }
 0x207   : > { %v567_v19 = vmul.f32 %v1723_v14, %v1695_v17  ;;  %v563_v23 = vmul.f32 %v1723_v14, %v2454_v4  ;;  %v565_v25 = vmul.f32 %v1723_v14, %v2456_v8  ;;  %v569_v28 = vmul.f32 %v1723_v14, %v1697_v20 }
 0x208   : > { %v573_v31 = vmul.f32 %v1723_v14, %v1701_v26  ;;  %v571_v36 = vmul.f32 %v1723_v14, %v1699_v24  ;;  %v577_v37 = vmul.f32 %v1723_v14, %v1711_v41  ;;  %v575_v42 = vmul.f32 %v1723_v14, %v1707_v35 }
 0x209   : > { %v1388_v43 = vpack.c.bf16 %v565_v25, %v563_v23  ;;  %v1394_v47 = vpack.c.bf16 %v569_v28, %v567_v19  ;;  %v592_v52 = vsel %vm586_vm2, %v567_v19, 0.0  ;;  %v588_v17 = vsel %vm586_vm2, %v563_v23, 0.0 }
 0x20a   : > { %v1400_v48 = vpack.c.bf16 %v573_v31, %v571_v36  ;;  %v2472_v51 = vpack.c.bf16 %v577_v37, %v575_v42  ;;  %v594_v4 = vsel %vm586_vm2, %v569_v28, 0.0  ;;  %v590_v8 = vsel %vm586_vm2, %v565_v25, 0.0 }
 0x20b   : > { %v598_v24 = vsel %vm586_vm2, %v573_v31, 0.0  ;;  %v596_v26 = vsel %vm586_vm2, %v571_v36, 0.0  ;;  %v602_v35 = vsel %vm586_vm2, %v577_v37, 0.0  ;;  %v600_v41 = vsel %vm586_vm2, %v575_v42, 0.0  ;;  %v611_v36 = vld [vmem:[#allocation3 + $0x38] sm:$0xff]  ;;  %v610_v37 = vld [vmem:[#allocation3 + $0x30] sm:$0xff] }
 0x20c   : > { %v1725_v20 = vpop.eup %1724 }
 0x20d   : > { %v564_v59 = vmul.f32 %v1725_v20, %v2460_v30  ;;  %v566_v61 = vmul.f32 %v1725_v20, %v2462_v32  ;;  %v568_v1 = vmul.f32 %v1725_v20, %v2466_v38  ;;  %v570_v3 = vmul.f32 %v1725_v20, %v1713_v44 }
 0x20e   : > { %v574_v54 = vmul.f32 %v1725_v20, %v1717_v53  ;;  %v572_v56 = vmul.f32 %v1725_v20, %v1715_v50  ;;  %v578_v58 = vmul.f32 %v1725_v20, %v1721_v5  ;;  %v576_v62 = vmul.f32 %v1725_v20, %v1719_v63  ;;  %v658_v20 = vld [vmem:[#allocation2 + $0x28] sm:$0xff] }
 0x20f   : > { %v1385_v2 = vpack.c.bf16 %v566_v61, %v564_v59  ;;  %v593_v6 = vsel %vm587_vm3, %v568_v1, 0.0  ;;  %v1391_v55 = vpack.c.bf16 %v570_v3, %v568_v1  ;;  %v589_v32 = vsel %vm587_vm3, %v564_v59, 0.0 }
 0x210   : > { %v618_v38 = vadd.f32 %v593_v6, %v592_v52  ;;  %v612_v44 = vadd.f32 %v589_v32, %v588_v17  ;;  %v595_v11 = vsel %vm587_vm3, %v570_v3, 0.0  ;;  %v591_v50 = vsel %vm587_vm3, %v566_v61, 0.0  ;;  %v657_v52 = vld [vmem:[#allocation2 + $0x20] sm:$0xff] }
 0x211   : > { %1386 = vmatprep.subr.msk.bf16.mxu0 %vm2487_vm4, %v1385_v2  ;;  %1515 = vmatprep.subr.msk.bf16.mxu1 %vm2487_vm4, %v1385_v2  ;;  %v621_v53 = vadd.f32 %v595_v11, %v594_v4  ;;  %v615_v63 = vadd.f32 %v591_v50, %v590_v8  ;;  %v599_v5 = vsel %vm587_vm3, %v574_v54, 0.0  ;;  %v597_v57 = vsel %vm587_vm3, %v572_v56, 0.0  ;;  %v654_v4 = vld [vmem:[#allocation2 + $0x8] sm:$0xff]  ;;  %v656_v2 = vld [vmem:[#allocation2 + $0x18] sm:$0xff] }
 0x212   : > { %619 = vadd.xlane.f32.xlu1 %v618_v38  ;;  %1389 = vmatpush1.bf16.xpose.msk.msra.mxu0 %vm2494_vm5, %v1388_v43  ;;  %v627_v12 = vadd.f32 %v599_v5, %v598_v24  ;;  %v624_v60 = vadd.f32 %v597_v57, %v596_v26  ;;  %v1397_v13 = vpack.c.bf16 %v574_v54, %v572_v56  ;;  %v603_v0 = vsel %vm587_vm3, %v578_v58, 0.0  ;;  %v655_v56 = vld [vmem:[#allocation2 + $0x10] sm:$0xff] }
 0x213   : > { %1519 = vmatpush1.bf16.xpose.msk.msra.mxu1 %vm2494_vm5, %v1388_v43  ;;  %613 = vadd.xlane.f32.xlu0 %v612_v44  ;;  %v633_v14 = vadd.f32 %v603_v0, %v602_v35  ;;  %v601_v18 = vsel %vm587_vm3, %v576_v62, 0.0  ;;  %v1403_v19 = vpack.c.bf16 %v578_v58, %v576_v62  ;;  %v659_v58 = vld [vmem:[#allocation2 + $0x30] sm:$0xff] }
 0x214   : > { %1392 = vmatprep.subr.msk.bf16.mxu0 %vm2487_vm4, %v1391_v55  ;;  %1516 = vmatprep.subr.msk.bf16.mxu1 %vm2487_vm4, %v1391_v55  ;;  %v630_v23 = vadd.f32 %v601_v18, %v600_v41  ;;  %v660_v55 = vld [vmem:[#allocation2 + $0x38] sm:$0xff] }
 0x216   : > { %622 = vadd.xlane.f32.xlu1 %v621_v53 }
 0x217   : > { %616 = vadd.xlane.f32.xlu0 %v615_v63 }
 0x21a   : > { %628 = vadd.xlane.f32.xlu1 %v627_v12  ;;  %1395 = vmatpush1.bf16.xpose.msk.msra.mxu0 %vm2494_vm5, %v1394_v47  ;;  %v661_v12 = vld [vmem:[#allocation2 + $0x40] sm:$0xff] }
 0x21b   : > { %1520 = vmatpush1.bf16.xpose.msk.msra.mxu1 %vm2494_vm5, %v1394_v47  ;;  %625 = vadd.xlane.f32.xlu0 %v624_v60 }
 0x21c   : > { %1398 = vmatprep.subr.msk.bf16.mxu0 %vm2487_vm4, %v1397_v13  ;;  %1517 = vmatprep.subr.msk.bf16.mxu1 %vm2487_vm4, %v1397_v13  ;;  %v662_v13 = vld [vmem:[#allocation2 + $0x48] sm:$0xff] }
 0x21e   : > { %634 = vadd.xlane.f32.xlu1 %v633_v14 }
 0x21f   : > { %631 = vadd.xlane.f32.xlu0 %v630_v23 }
 0x222   : > { %1401 = vmatpush1.bf16.xpose.msk.msra.mxu0 %vm2494_vm5, %v1400_v48 }
 0x223   : > { %1521 = vmatpush1.bf16.xpose.msk.msra.mxu1 %vm2494_vm5, %v1400_v48  ;;  %1404 = vmatprep.subr.msk.bf16.mxu0 %vm2487_vm4, %v1403_v19 }
 0x224   : > { %1518 = vmatprep.subr.msk.bf16.mxu1 %vm2487_vm4, %v1403_v19 }
 0x22a   : > { %1407 = vmatpush1.bf16.xpose.msk.msra.mxu0 %vm2494_vm5, %v2472_v51 }
 0x22b   : > { %1522 = vmatpush1.bf16.xpose.msk.msra.mxu1 %vm2494_vm5, %v2472_v51  ;;  %v653_v51 = vld [vmem:[#allocation2] sm:$0xff] }
 0x231   : > { %710 = vmatmul.mubr.bf16.vlgmr.msra.gmra.mrb[16].mxu0 %v2349_v9  ;;  %v606_v9 = vld [vmem:[#allocation3 + $0x10] sm:$0xff] }
 0x232   : > { %726 = vmatmul.mubr.bf16.vlgmr.msra.gmra.mrb[0].mxu1 %v2367_v21  ;;  %717 = vmatprep.mubr.bf16.mxu0 %v2351_v10  ;;  %v604_v10 = vld [vmem:[#allocation3] sm:$0xff] }
 0x233   : > { %733 = vmatprep.mubr.bf16.mxu1 %v2369_v22 }
 0x239   : > { %718 = vmatmul.mubr.bf16.gmra.mrb[20].mxu0 %v2359_v15 }
 0x23a   : > { %734 = vmatmul.mubr.bf16.gmra.mrb[4].mxu1 %v2376_v27 }
 0x23b   : > { %741 = vmatprep.mubr.bf16.mxu1 %v2380_v29  ;;  %v607_v29 = vld [vmem:[#allocation3 + $0x18] sm:$0xff] }
 0x242   : > { %742 = vmatmul.mubr.bf16.gmra.mrb[8].mxu1 %v2386_v33  ;;  %v605_v33 = vld [vmem:[#allocation3 + $0x8] sm:$0xff] }
 0x243   : > { %749 = vmatprep.mubr.bf16.mxu1 %v2389_v34 }
 0x24a   : > { %750 = vmatmul.mubr.bf16.gmra.mrb[12].mxu1 %v2396_v39 }
 0x24b   : > { %757 = vmatprep.mubr.bf16.mxu1 %v2399_v40 }
 0x252   : > { %758 = vmatmul.mubr.bf16.gmra.mrb[16].mxu1 %v2406_v45 }
 0x253   : > { %765 = vmatprep.mubr.bf16.mxu1 %v2409_v46  ;;  %v609_v46 = vld [vmem:[#allocation3 + $0x28] sm:$0xff] }
 0x25a   : > { %766 = vmatmul.mubr.bf16.gmra.mrb[20].mxu1 %v2414_v49  ;;  %v608_v49 = vld [vmem:[#allocation3 + $0x20] sm:$0xff] }
 0x29f   : > { %v620_v15 = vpop.xlane.xlu1 %619 }
 0x2a0   : > { %v638_v21 = vadd.f32 %v620_v15, %v606_v9  ;;  %v614_v22 = vpop.xlane.xlu0 %613  ;;  %v663_v9 = vld [vmem:[#allocation2 + $0x50] sm:$0xff]  ;;  %v664_v15 = vld [vmem:[#allocation2 + $0x58] sm:$0xff] }
 0x2a1   : > { %v636_v27 = vadd.f32 %v614_v22, %v604_v10 }
 0x2a2   : > { %647 = vst.msk [vmem:[#allocation3 + $0x10] sm:$0xff] %vm644_vm6, %v638_v21 }
 0x2a3   : > { %645 = vst.msk [vmem:[#allocation3] sm:$0xff] %vm644_vm6, %v636_v27  ;;  %v623_v34 = vpop.xlane.xlu1 %622 }
 0x2a4   : > { %v639_v39 = vadd.f32 %v623_v34, %v607_v29  ;;  %v617_v40 = vpop.xlane.xlu0 %616  ;;  %v665_v34 = vld [vmem:[#allocation2 + $0x60] sm:$0xff] }
 0x2a5   : > { %v637_v45 = vadd.f32 %v617_v40, %v605_v33  ;;  %v666_v40 = vld [vmem:[#allocation2 + $0x68] sm:$0xff] }
 0x2a6   : > { %648 = vst.msk [vmem:[#allocation3 + $0x18] sm:$0xff] %vm644_vm6, %v639_v39 }
 0x2a7   : > { %646 = vst.msk [vmem:[#allocation3 + $0x8] sm:$0xff] %vm644_vm6, %v637_v45  ;;  %v629_v16 = vpop.xlane.xlu1 %628 }
 0x2a8   : > { %v641_v25 = vadd.f32 %v629_v16, %v609_v46  ;;  %v626_v28 = vpop.xlane.xlu0 %625 }
 0x2a9   : > { %v640_v31 = vadd.f32 %v626_v28, %v608_v49  ;;  %v667_v28 = vld [vmem:[#allocation2 + $0x70] sm:$0xff] }
 0x2aa   : > { %650 = vst.msk [vmem:[#allocation3 + $0x28] sm:$0xff] %vm644_vm6, %v641_v25 }
 0x2ab   : > { %649 = vst.msk [vmem:[#allocation3 + $0x20] sm:$0xff] %vm644_vm6, %v640_v31  ;;  %v635_v42 = vpop.xlane.xlu1 %634 }
 0x2ac   : > { %v643_v43 = vadd.f32 %v635_v42, %v611_v36  ;;  %v632_v47 = vpop.xlane.xlu0 %631  ;;  %v668_v36 = vld [vmem:[#allocation2 + $0x78] sm:$0xff] }
 0x2ad   : > { %v642_v48 = vadd.f32 %v632_v47, %v610_v37 }
 0x2ae   : > { %652 = vst.msk [vmem:[#allocation3 + $0x38] sm:$0xff] %vm644_vm6, %v643_v43 }
 0x2af   : > { %651 = vst.msk [vmem:[#allocation3 + $0x30] sm:$0xff] %vm644_vm6, %v642_v48 }
 0x304   : > { %v711_v17 = vpop.f32.mrb[16].mxu0 }
 0x305   : > { %v727_v8 = vpop.f32.mrb[0].mxu1  ;;  %v774_v24 = vadd.f32 %v711_v17, %v653_v51  ;;  %v713_v26 = vpop.f32.mrb[17].mxu0  ;;  %v843_v17 = vld [vmem:[#allocation10] sm:$0xff] (!%p1408_p3) }
 0x306   : > { %v778_v35 = vadd.f32 %v727_v8, %v657_v52  ;;  %v729_v41 = vpop.f32.mrb[1].mxu1  ;;  %v714_v59 = vpop.f32.mrb[18].mxu0  ;;  %v846_v26 = vld [vmem:[#allocation10 + $0x18] sm:$0xff] (!%p1408_p3) }
 0x307   : > { %v730_v61 = vpop.f32.mrb[2].mxu1  ;;  %791 = vst.msk [vmem:[#allocation2] sm:$0xff] %vm790_vm7, %v774_v24  ;;  %v775_v1 = vadd.f32 %v714_v59, %v654_v4  ;;  %v716_v3 = vpop.f32.mrb[19].mxu0  ;;  %v844_v4 = vld [vmem:[#allocation10 + $0x8] sm:$0xff] (!%p1408_p3)  ;;  %v845_v24 = vld [vmem:[#allocation10 + $0x10] sm:$0xff] (!%p1408_p3)  ;;  %v847_v41 = vld [vmem:[#allocation10 + $0x20] sm:$0xff] (!%p1408_p3) }
 0x308   : > { %795 = vst.msk [vmem:[#allocation2 + $0x20] sm:$0xff] %vm790_vm7, %v778_v35  ;;  %v779_v7 = vadd.f32 %v730_v61, %v658_v20  ;;  %v732_v54 = vpop.f32.mrb[3].mxu1  ;;  %v1483_v20 = vpack.c.bf16 (!%p1408_p3), %v844_v4, %v843_v17  ;;  %v1487_v35 = vpack.c.bf16 (!%p1408_p3), %v846_v26, %v845_v24  ;;  %v848_v59 = vld [vmem:[#allocation10 + $0x28] sm:$0xff] (!%p1408_p3)  ;;  %v849_v3 = vld [vmem:[#allocation10 + $0x30] sm:$0xff] (!%p1408_p3)  ;;  %v822_v24 = vld [vmem:[#allocation9 + $0x18] sm:$0xff] (!%p1408_p3) }
 0x309   : > { %792 = vst.msk [vmem:[#allocation2 + $0x8] sm:$0xff] %vm790_vm7, %v775_v1  ;;  %v1491_v1 = vpack.c.bf16 (!%p1408_p3), %v848_v59, %v847_v41  ;;  %v821_v41 = vld [vmem:[#allocation9 + $0x10] sm:$0xff] (!%p1408_p3) }
 0x30a   : > { %796 = vst.msk [vmem:[#allocation2 + $0x28] sm:$0xff] %vm790_vm7, %v779_v7  ;;  %1484 = vmatprep.subr.bf16.mxu0 (!%p1408_p3), %v1483_v20  ;;  %1523 = vmatprep.subr.bf16.mxu1 (!%p1408_p3), %v1483_v20  ;;  %v850_v7 = vld [vmem:[#allocation10 + $0x38] sm:$0xff] (!%p1408_p3) }
 0x30b   : > { %1486 = vmatpush3.bf16.msra.mxu0 (!%p1408_p3), %v1483_v20  ;;  %1531 = vmatpush3.bf16.msra.mxu1 (!%p1408_p3), %v1483_v20 }
 0x30c   : > { %v719_v62 = vpop.f32.mrb[20].mxu0  ;;  %1488 = vmatprep.subr.bf16.mxu0 (!%p1408_p3), %v1487_v35  ;;  %1524 = vmatprep.subr.bf16.mxu1 (!%p1408_p3), %v1487_v35 }
 0x30d   : > { %v735_v6 = vpop.f32.mrb[4].mxu1  ;;  %v776_v30 = vadd.f32 %v719_v62, %v655_v56  ;;  %v721_v32 = vpop.f32.mrb[21].mxu0  ;;  %v1495_v56 = vpack.c.bf16 (!%p1408_p3), %v850_v7, %v849_v3  ;;  %v852_v62 = vld [vmem:[#allocation10 + $0x48] sm:$0xff] (!%p1408_p3) }
 0x30e   : > { %v780_v38 = vadd.f32 %v735_v6, %v659_v58  ;;  %v737_v44 = vpop.f32.mrb[5].mxu1  ;;  %v722_v11 = vpop.f32.mrb[22].mxu0  ;;  %v827_v51 = vld [vmem:[#allocation2] sm:$0xff] (!%p1408_p3) }
 0x30f   : > { %v738_v50 = vpop.f32.mrb[6].mxu1  ;;  %793 = vst.msk [vmem:[#allocation2 + $0x10] sm:$0xff] %vm790_vm7, %v776_v30  ;;  %v777_v53 = vadd.f32 %v722_v11, %v656_v2  ;;  %v724_v63 = vpop.f32.mrb[23].mxu0  ;;  %859 = vxpose.xlu0.b32.start [1/16] (narrow) (!%p1408_p3), %v827_v51, 64  ;;  %1490 = vmatpush3.bf16.msra.mxu0 (!%p1408_p3), %v1487_v35  ;;  %v831_v54 = vld [vmem:[#allocation2 + $0x20] sm:$0xff] (!%p1408_p3)  ;;  %v854_v30 = vld [vmem:[#allocation10 + $0x58] sm:$0xff] (!%p1408_p3) }
 0x310   : > { %797 = vst.msk [vmem:[#allocation2 + $0x30] sm:$0xff] %vm790_vm7, %v780_v38  ;;  %v781_v5 = vadd.f32 %v738_v50, %v660_v55  ;;  %v740_v57 = vpop.f32.mrb[7].mxu1  ;;  %v828_v52 = vld [vmem:[#allocation2 + $0x8] sm:$0xff] (!%p1408_p3)  ;;  %1492 = vmatprep.subr.bf16.mxu0 (!%p1408_p3), %v1491_v1  ;;  %1532 = vmatpush3.bf16.msra.mxu1 (!%p1408_p3), %v1487_v35  ;;  %v851_v58 = vld [vmem:[#allocation10 + $0x40] sm:$0xff] (!%p1408_p3)  ;;  %v853_v55 = vld [vmem:[#allocation10 + $0x50] sm:$0xff] (!%p1408_p3) }
 0x311   : > { %794 = vst.msk [vmem:[#allocation2 + $0x18] sm:$0xff] %vm790_vm7, %v777_v53  ;;  %1525 = vmatprep.subr.bf16.mxu1 (!%p1408_p3), %v1491_v1  ;;  %v832_v2 = vld [vmem:[#allocation2 + $0x28] sm:$0xff] (!%p1408_p3)  ;;  %v1499_v6 = vpack.c.bf16 (!%p1408_p3), %v852_v62, %v851_v58  ;;  %v1503_v38 = vpack.c.bf16 (!%p1408_p3), %v854_v30, %v853_v55  ;;  %v855_v44 = vld [vmem:[#allocation10 + $0x60] sm:$0xff] (!%p1408_p3)  ;;  %v857_v63 = vld [vmem:[#allocation10 + $0x70] sm:$0xff] (!%p1408_p3) }
 0x312   : > { %798 = vst.msk [vmem:[#allocation2 + $0x38] sm:$0xff] %vm790_vm7, %v781_v5  ;;  %v856_v11 = vld [vmem:[#allocation10 + $0x68] sm:$0xff] (!%p1408_p3)  ;;  %v858_v5 = vld [vmem:[#allocation10 + $0x78] sm:$0xff] (!%p1408_p3) }
 0x313   : > { %860 = vxpose.xlu0.b32.cont [2/16] (narrow) (!%p1408_p3), %v828_v52, 64  ;;  %1494 = vmatpush3.bf16.msra.mxu0 (!%p1408_p3), %v1491_v1  ;;  %v1507_v53 = vpack.c.bf16 (!%p1408_p3), %v856_v11, %v855_v44  ;;  %v824_v62 = vld [vmem:[#allocation9 + $0x28] sm:$0xff] (!%p1408_p3) }
 0x314   : > { %1496 = vmatprep.subr.bf16.mxu0 (!%p1408_p3), %v1495_v56  ;;  %1533 = vmatpush3.bf16.msra.mxu1 (!%p1408_p3), %v1491_v1 }
 0x315   : > { %v743_v60 = vpop.f32.mrb[8].mxu1  ;;  %1526 = vmatprep.subr.bf16.mxu1 (!%p1408_p3), %v1495_v56 }
 0x316   : > { %v782_v0 = vadd.f32 %v743_v60, %v661_v12  ;;  %v745_v14 = vpop.f32.mrb[9].mxu1  ;;  %v829_v8 = vld [vmem:[#allocation2 + $0x10] sm:$0xff] (!%p1408_p3)  ;;  %v1511_v12 = vpack.c.bf16 (!%p1408_p3), %v858_v5, %v857_v63  ;;  %v811_v60 = vld [vmem:[#allocation3] sm:$0xff] (!%p1408_p3)  ;;  %v826_v5 = vld [vmem:[#allocation9 + $0x38] sm:$0xff] (!%p1408_p3) }
 0x317   : > { %v746_v18 = vpop.f32.mrb[10].mxu1  ;;  %861 = vxpose.xlu0.b32.cont [3/16] (narrow) (!%p1408_p3), %v829_v8, 64  ;;  %1498 = vmatpush3.bf16.msra.mxu0 (!%p1408_p3), %v1495_v56  ;;  %v833_v32 = vld [vmem:[#allocation2 + $0x30] sm:$0xff] (!%p1408_p3) }
 0x318   : > { %799 = vst.msk [vmem:[#allocation2 + $0x40] sm:$0xff] %vm790_vm7, %v782_v0  ;;  %v783_v19 = vadd.f32 %v746_v18, %v662_v13  ;;  %v748_v23 = vpop.f32.mrb[11].mxu1  ;;  %v830_v61 = vld [vmem:[#allocation2 + $0x18] sm:$0xff] (!%p1408_p3)  ;;  %1500 = vmatprep.subr.bf16.mxu0 (!%p1408_p3), %v1499_v6  ;;  %1534 = vmatpush3.bf16.msra.mxu1 (!%p1408_p3), %v1495_v56  ;;  %v2023_v13 = vmov (!%p1408_p3), 0   ;;  %v812_v0 = vld [vmem:[#allocation3 + $0x8] sm:$0xff] (!%p1408_p3)  ;;  %v813_v18 = vld [vmem:[#allocation3 + $0x10] sm:$0xff] (!%p1408_p3) }
 0x319   : > { %1527 = vmatprep.subr.bf16.mxu1 (!%p1408_p3), %v1499_v6  ;;  %v834_v50 = vld [vmem:[#allocation2 + $0x38] sm:$0xff] (!%p1408_p3)  ;;  %1726 = vset.pattern.permute.xlu1 (!%p1408_p3), %v2023_v13  ;;  %v825_v63 = vld [vmem:[#allocation9 + $0x30] sm:$0xff] (!%p1408_p3) }
 0x31a   : > { %800 = vst.msk [vmem:[#allocation2 + $0x48] sm:$0xff] %vm790_vm7, %v783_v19  ;;  %998 = vperm.xlu1 (!%p1408_p3), %1726, %v811_v60   ;;  %v814_v23 = vld [vmem:[#allocation3 + $0x18] sm:$0xff] (!%p1408_p3) }
 0x31b   : > { %862 = vxpose.xlu0.b32.cont [4/16] (narrow) (!%p1408_p3), %v830_v61, 64  ;;  %1502 = vmatpush3.bf16.msra.mxu0 (!%p1408_p3), %v1499_v6 }
 0x31c   : > { %1504 = vmatprep.subr.bf16.mxu0 (!%p1408_p3), %v1503_v38  ;;  %1535 = vmatpush3.bf16.msra.mxu1 (!%p1408_p3), %v1499_v6 }
 0x31d   : > { %v751_v10 = vpop.f32.mrb[12].mxu1  ;;  %1528 = vmatprep.subr.bf16.mxu1 (!%p1408_p3), %v1503_v38 }
 0x31e   : > { %v784_v21 = vadd.f32 %v751_v10, %v663_v9  ;;  %v753_v22 = vpop.f32.mrb[13].mxu1  ;;  %1003 = vperm.xlu1 (!%p1408_p3), %1726, %v812_v0   ;;  %v815_v10 = vld [vmem:[#allocation3 + $0x20] sm:$0xff] (!%p1408_p3) }
 0x31f   : > { %v754_v27 = vpop.f32.mrb[14].mxu1  ;;  %863 = vxpose.xlu0.b32.cont [5/16] (narrow) (!%p1408_p3), %v831_v54, 64  ;;  %1506 = vmatpush3.bf16.msra.mxu0 (!%p1408_p3), %v1503_v38  ;;  %v835_v57 = vld [vmem:[#allocation2 + $0x40] sm:$0xff] (!%p1408_p3) }
 0x320   : > { %801 = vst.msk [vmem:[#allocation2 + $0x50] sm:$0xff] %vm790_vm7, %v784_v21  ;;  %v785_v29 = vadd.f32 %v754_v27, %v664_v15  ;;  %v756_v33 = vpop.f32.mrb[15].mxu1  ;;  %1508 = vmatprep.subr.bf16.mxu0 (!%p1408_p3), %v1507_v53  ;;  %1536 = vmatpush3.bf16.msra.mxu1 (!%p1408_p3), %v1503_v38  ;;  %v816_v21 = vld [vmem:[#allocation3 + $0x28] sm:$0xff] (!%p1408_p3)  ;;  %v817_v27 = vld [vmem:[#allocation3 + $0x30] sm:$0xff] (!%p1408_p3) }
 0x321   : > { %1529 = vmatprep.subr.bf16.mxu1 (!%p1408_p3), %v1507_v53  ;;  %v836_v14 = vld [vmem:[#allocation2 + $0x48] sm:$0xff] (!%p1408_p3)  ;;  %v818_v33 = vld [vmem:[#allocation3 + $0x38] sm:$0xff] (!%p1408_p3) }
 0x322   : > { %802 = vst.msk [vmem:[#allocation2 + $0x58] sm:$0xff] %vm790_vm7, %v785_v29  ;;  %1008 = vperm.xlu1 (!%p1408_p3), %1726, %v813_v18  }
 0x323   : > { %864 = vxpose.xlu0.b32.cont [6/16] (narrow) (!%p1408_p3), %v832_v2, 64  ;;  %1510 = vmatpush3.bf16.msra.mxu0 (!%p1408_p3), %v1507_v53  ;;  %v823_v2 = vld [vmem:[#allocation9 + $0x20] sm:$0xff] (!%p1408_p3) }
 0x324   : > { %1512 = vmatprep.subr.bf16.mxu0 (!%p1408_p3), %v1511_v12  ;;  %1537 = vmatpush3.bf16.msra.mxu1 (!%p1408_p3), %v1507_v53 }
 0x325   : > { %v759_v39 = vpop.f32.mrb[16].mxu1  ;;  %1530 = vmatprep.subr.bf16.mxu1 (!%p1408_p3), %v1511_v12 }
 0x326   : > { %v786_v45 = vadd.f32 %v759_v39, %v665_v34  ;;  %v761_v46 = vpop.f32.mrb[17].mxu1  ;;  %1013 = vperm.xlu1 (!%p1408_p3), %1726, %v814_v23  }
 0x327   : > { %v762_v49 = vpop.f32.mrb[18].mxu1  ;;  %865 = vxpose.xlu0.b32.cont [7/16] (narrow) (!%p1408_p3), %v833_v32, 64  ;;  %1514 = vmatpush3.bf16.msra.mxu0 (!%p1408_p3), %v1511_v12  ;;  %v837_v19 = vld [vmem:[#allocation2 + $0x50] sm:$0xff] (!%p1408_p3) }
 0x328   : > { %803 = vst.msk [vmem:[#allocation2 + $0x60] sm:$0xff] %vm790_vm7, %v786_v45  ;;  %v787_v16 = vadd.f32 %v762_v49, %v666_v40  ;;  %v764_v25 = vpop.f32.mrb[19].mxu1  ;;  %1538 = vmatpush3.bf16.msra.mxu1 (!%p1408_p3), %v1511_v12 }
 0x329   : > { %v838_v9 = vld [vmem:[#allocation2 + $0x58] sm:$0xff] (!%p1408_p3) }
 0x32a   : > { %804 = vst.msk [vmem:[#allocation2 + $0x68] sm:$0xff] %vm790_vm7, %v787_v16  ;;  %1018 = vperm.xlu1 (!%p1408_p3), %1726, %v815_v10  }
 0x32b   : > { %866 = vxpose.xlu0.b32.cont [8/16] (narrow) (!%p1408_p3), %v834_v50, 64 }
 0x32c   : > { %810 = sbr.rel (%p1408_p3) target bundleno = 1580 (0x62c), region = 60 }
 0x32d   : > { %v767_v31 = vpop.f32.mrb[20].mxu1 }
 0x32e   : > { %v788_v37 = vadd.f32 %v767_v31, %v667_v28  ;;  %v769_v42 = vpop.f32.mrb[21].mxu1  ;;  %1023 = vperm.xlu1 (!%p1408_p3), %1726, %v816_v21  }
 0x32f   : > { %v770_v43 = vpop.f32.mrb[22].mxu1  ;;  %867 = vxpose.xlu0.b32.cont [9/16] (narrow) (!%p1408_p3), %v835_v57, 64  ;;  %v839_v15 = vld [vmem:[#allocation2 + $0x60] sm:$0xff] (!%p1408_p3)  ;;  %v820_v42 = vld [vmem:[#allocation9 + $0x8] sm:$0xff] (!%p1408_p3) }
 0x330   : > { %805 = vst.msk [vmem:[#allocation2 + $0x70] sm:$0xff] %vm790_vm7, %v788_v37  ;;  %v789_v47 = vadd.f32 %v770_v43, %v668_v36  ;;  %v772_v48 = vpop.f32.mrb[23].mxu1  ;;  %v819_v43 = vld [vmem:[#allocation9] sm:$0xff] (!%p1408_p3) }
 0x331   : > { %v840_v22 = vld [vmem:[#allocation2 + $0x68] sm:$0xff] (!%p1408_p3) }
 0x332   : > { %806 = vst.msk [vmem:[#allocation2 + $0x78] sm:$0xff] %vm790_vm7, %v789_v47  ;;  %1028 = vperm.xlu1 (!%p1408_p3), %1726, %v817_v27  }
 0x333   : > { %868 = vxpose.xlu0.b32.cont [10/16] (narrow) %v836_v14, 64 }
 0x336   : > { %1033 = vperm.xlu1 %1726, %v818_v33  }
 0x337   : > { %869 = vxpose.xlu0.b32.cont [11/16] (narrow) %v837_v19, 64  ;;  %v841_v29 = vld [vmem:[#allocation2 + $0x70] sm:$0xff] }
 0x339   : > { %v842_v34 = vld [vmem:[#allocation2 + $0x78] sm:$0xff] }
 0x33b   : > { %870 = vxpose.xlu0.b32.cont [12/16] (narrow) %v838_v9, 64 }
 0x33f   : > { %871 = vxpose.xlu0.b32.cont [13/16] (narrow) %v839_v15, 64 }
 0x343   : > { %872 = vxpose.xlu0.b32.cont [14/16] (narrow) %v840_v22, 64 }
 0x347   : > { %873 = vxpose.xlu0.b32.cont [15/16] (narrow) %v841_v29, 64 }
 0x34b   : > { %874 = vxpose.xlu0.b32.end [16/16] (narrow) %v842_v34, 64 }
 0x374   : > { %1727 = vset.pattern.permute.xlu0 %v2023_v13 }
 0x38f   : > { %v875_v39 = vpop.trf.xlu0 }
 0x390   : > { %1471 = vmatprep.mubr.f32.mxu0 %v875_v39 }
 0x393   : > { %v876_v40 = vpop.trf.xlu0 }
 0x394   : > { %1472 = vmatmul.mubr.f32.vlgmr.msra.gmra.mrb[0].mxu0 %v876_v40 }
 0x397   : > { %v877_v45 = vpop.trf.xlu0 }
 0x398   : > { %1474 = vmatprep.mubr.f32.mxu0 %v877_v45 }
 0x399   : > { %v999_v31 = vpop.permute.xlu1 %998 }
 0x39a   : > { %v1036_v51 = vmul.f32 %v999_v31, %v819_v43 }
 0x39b   : > { %v878_v46 = vpop.trf.xlu0 }
 0x39c   : > { %1475 = vmatmul.mubr.f32.gmra.mrb[2].mxu0 %v878_v46 }
 0x39d   : > { %v1004_v36 = vpop.permute.xlu1 %1003 }
 0x39e   : > { %v1037_v47 = vmul.f32 %v1004_v36, %v820_v42 }
 0x39f   : > { %v879_v49 = vpop.trf.xlu0 }
 0x3a0   : > { %1477 = vmatprep.mubr.f32.mxu1 %v879_v49 }
 0x3a1   : > { %v1009_v37 = vpop.permute.xlu1 %1008 }
 0x3a2   : > { %v1038_v1 = vmul.f32 %v1009_v37, %v821_v41 }
 0x3a3   : > { %v880_v16 = vpop.trf.xlu0 }
 0x3a4   : > { %1478 = vmatmul.mubr.f32.vlgmr.msra.gmra.mrb[0].mxu1 %v880_v16 }
 0x3a5   : > { %v1014_v48 = vpop.permute.xlu1 %1013 }
 0x3a6   : > { %v1039_v59 = vmul.f32 %v1014_v48, %v822_v24 }
 0x3a7   : > { %v881_v25 = vpop.trf.xlu0 }
 0x3a8   : > { %1480 = vmatprep.mubr.f32.mxu1 %v881_v25 }
 0x3a9   : > { %v1019_v35 = vpop.permute.xlu1 %1018 }
 0x3aa   : > { %v1040_v32 = vmul.f32 %v1019_v35, %v823_v2 }
 0x3ab   : > { %v882_v28 = vpop.trf.xlu0 }
 0x3ac   : > { %1481 = vmatmul.mubr.f32.gmra.mrb[2].mxu1 %v882_v28 }
 0x3ad   : > { %v1024_v54 = vpop.permute.xlu1 %1023 }
 0x3ae   : > { %v1041_v6 = vmul.f32 %v1024_v54, %v824_v62 }
 0x3b1   : > { %v1029_v38 = vpop.permute.xlu1 %1028 }
 0x3b2   : > { %v1042_v60 = vmul.f32 %v1029_v38, %v825_v63 }
 0x3b5   : > { %v1034_v57 = vpop.permute.xlu1 %1033 }
 0x3b6   : > { %v1043_v14 = vmul.f32 %v1034_v57, %v826_v5 }
 0x467   : > { %v1473_v52 = vpop.f32.mrb[0].mxu0 }
 0x468   : > { %v2578_v17 = vsub.f32 %v1473_v52, %v1037_v47  ;;  %v957_v4 = vpop.f32.mrb[1].mxu0 }
 0x469   : > { %v2580_v8 = vsub.f32 %v957_v4, %v1036_v51 }
 0x46a   : > { %v1053_v20 = vmul.f32 %v2578_v17, %v2578_v17 }
 0x46b   : > { %v1052_v26 = vmul.f32 %v2580_v8, %v2580_v8 }
 0x46c   : > { %1062 = vadd.xlane.f32.xlu0 %v1053_v20 }
 0x46d   : > { %1060 = vadd.xlane.f32.xlu1 %v1052_v26 }
 0x46f   : > { %v1476_v61 = vpop.f32.mrb[2].mxu0 }
 0x470   : > { %v2586_v3 = vsub.f32 %v1476_v61, %v1039_v59  ;;  %v967_v7 = vpop.f32.mrb[3].mxu0 }
 0x471   : > { %v2588_v56 = vsub.f32 %v967_v7, %v1038_v1 }
 0x472   : > { %v1055_v58 = vmul.f32 %v2586_v3, %v2586_v3 }
 0x473   : > { %v1054_v55 = vmul.f32 %v2588_v56, %v2588_v56 }
 0x474   : > { %1066 = vadd.xlane.f32.xlu1 %v1055_v58 }
 0x477   : > { %v1479_v30 = vpop.f32.mrb[0].mxu1 }
 0x478   : > { %v2594_v44 = vsub.f32 %v1479_v30, %v1041_v6  ;;  %v977_v11 = vpop.f32.mrb[1].mxu1  ;;  %1064 = vadd.xlane.f32.xlu1 %v1054_v55 }
 0x479   : > { %v2596_v50 = vsub.f32 %v977_v11, %v1040_v32 }
 0x47a   : > { %v1057_v53 = vmul.f32 %v2594_v44, %v2594_v44 }
 0x47b   : > { %v1056_v12 = vmul.f32 %v2596_v50, %v2596_v50 }
 0x47c   : > { %1070 = vadd.xlane.f32.xlu1 %v1057_v53 }
 0x47f   : > { %v1482_v13 = vpop.f32.mrb[2].mxu1 }
 0x480   : > { %v987_v0 = vpop.f32.mrb[3].mxu1  ;;  %1068 = vadd.xlane.f32.xlu1 %v1056_v12  ;;  %v2604_v19 = vsub.f32 %v1482_v13, %v1043_v14 }
 0x481   : > { %v2602_v18 = vsub.f32 %v987_v0, %v1042_v60 }
 0x482   : > { %v1059_v9 = vmul.f32 %v2604_v19, %v2604_v19 }
 0x483   : > { %v1058_v23 = vmul.f32 %v2602_v18, %v2602_v18 }
 0x485   : > { %1072 = vadd.xlane.f32.xlu1 %v1058_v23 }
 0x489   : > { %1074 = vadd.xlane.f32.xlu1 %v1059_v9 }
 0x4f9   : > { %v2610_v10 = vpop.xlane.xlu0 %1062 }
 0x4fa   : > { %1728 = vrsqrt.f32 %v2610_v10  ;;  %v2613_v15 = vpop.xlane.xlu1 %1060  ;;  %vm1085_vm8 = vcmp.eq.f32.partialorder %v2610_v10, inf  ;;  %v1088_v34 = vand.u32 2147483648, %v2610_v10  ;;  %vm1087_vm9 = vcmp.eq.f32.partialorder %v2610_v10, 0.0 }
 0x4fb   : > { %1730 = vrsqrt.f32 %v2613_v15  ;;  %vm1078_vm10 = vcmp.eq.f32.partialorder %v2613_v15, inf  ;;  %v1081_v45 = vand.u32 2147483648, %v2613_v15  ;;  %vm1080_vm11 = vcmp.eq.f32.partialorder %v2613_v15, 0.0 }
 0x501   : > { %v2616_v21 = vpop.xlane.xlu1 %1066 }
 0x502   : > { %1732 = vrsqrt.f32 %v2616_v21  ;;  %vm1099_vm12 = vcmp.eq.f32.partialorder %v2616_v21, inf  ;;  %v1102_v43 = vand.u32 2147483648, %v2616_v21  ;;  %vm1101_vm13 = vcmp.eq.f32.partialorder %v2616_v21, 0.0 }
 0x504   : > { %v1729_v22 = vpop.eup %1728 }
 0x505   : > { %v1731_v27 = vpop.eup %1730  ;;  %v1084_v29 = vmul.f32 %v1729_v22, %v2610_v10  ;;  %v2620_v33 = vpop.xlane.xlu1 %1064 }
 0x506   : > { %v1077_v39 = vmul.f32 %v1731_v27, %v2613_v15  ;;  %1734 = vrsqrt.f32 %v2620_v33  ;;  %vm1092_vm14 = vcmp.eq.f32.partialorder %v2620_v33, inf  ;;  %v1095_v20 = vand.u32 2147483648, %v2620_v33 }
 0x507   : > { %v1086_v40 = vsel %vm1085_vm8, %v2610_v10, %v1084_v29  ;;  %vm1094_vm15 = vcmp.eq.f32.partialorder %v2620_v33, 0.0 }
 0x508   : > { %v1089_v46 = vsel %vm1087_vm9, %v1088_v34, %v1086_v40  ;;  %v1079_v49 = vsel %vm1078_vm10, %v2613_v15, %v1077_v39 }
 0x509   : > { %v1133_v16 = vmax.f32 %v1089_v46, 1e-12  ;;  %v1082_v25 = vsel %vm1080_vm11, %v1081_v45, %v1079_v49  ;;  %v2632_v28 = vpop.xlane.xlu1 %1070 }
 0x50a   : > { %1736 = vrsqrt.f32 %v2632_v28  ;;  %v1132_v31 = vmax.f32 %v1082_v25, 1e-12  ;;  %vm1113_vm0 = vcmp.eq.f32.partialorder %v2632_v28, inf  ;;  %v1116_v1 = vand.u32 2147483648, %v2632_v28 }
 0x50b   : > { %1738 = vrcp.f32 %v1133_v16  ;;  %vm1115_vm1 = vcmp.eq.f32.partialorder %v2632_v28, 0.0 }
 0x50c   : > { %v1733_v36 = vpop.eup %1732 }
 0x50d   : > { %v1098_v37 = vmul.f32 %v1733_v36, %v2616_v21  ;;  %v2636_v42 = vpop.xlane.xlu1 %1068 }
 0x50e   : > { %1740 = vrsqrt.f32 %v2636_v42  ;;  %vm1106_vm2 = vcmp.eq.f32.partialorder %v2636_v42, inf  ;;  %v1109_v32 = vand.u32 2147483648, %v2636_v42  ;;  %vm1108_vm3 = vcmp.eq.f32.partialorder %v2636_v42, 0.0 }
 0x50f   : > { %1742 = vrcp.f32 %v1132_v31  ;;  %v1100_v47 = vsel %vm1099_vm12, %v2616_v21, %v1098_v37 }
 0x510   : > { %v1735_v48 = vpop.eup %1734  ;;  %v1103_v51 = vsel %vm1101_vm13, %v1102_v43, %v1100_v47 }
 0x511   : > { %v1091_v52 = vmul.f32 %v1735_v48, %v2620_v33  ;;  %v1135_v4 = vmax.f32 %v1103_v51, 1e-12 }
 0x512   : > { %v2646_v24 = vpop.xlane.xlu1 %1072 }
 0x513   : > { %v1093_v26 = vsel %vm1092_vm14, %v2620_v33, %v1091_v52  ;;  %1744 = vrsqrt.f32 %v2646_v24  ;;  %vm1120_vm4 = vcmp.eq.f32.partialorder %v2646_v24, inf  ;;  %v1123_v0 = vand.u32 2147483648, %v2646_v24 }
 0x514   : > { %v1737_v35 = vpop.eup %1736  ;;  %v1096_v41 = vsel %vm1094_vm15, %v1095_v20, %v1093_v26  ;;  %1746 = vrcp.f32 %v1135_v4  ;;  %vm1122_vm5 = vcmp.eq.f32.partialorder %v2646_v24, 0.0 }
 0x515   : > { %v1134_v59 = vmax.f32 %v1096_v41, 1e-12  ;;  %v1112_v61 = vmul.f32 %v1737_v35, %v2632_v28  ;;  %v2656_v54 = vpop.eup %1738 }
 0x516   : > { %v2654_v7 = vpop.xlane.xlu1 %1074  ;;  %v1157_v11 = vmul.f32 %v2656_v54, %v2610_v10 }
 0x517   : > { %1748 = vrcp.f32 %v1134_v59  ;;  %v1114_v58 = vsel %vm1113_vm0, %v2632_v28, %v1112_v61  ;;  %vm1127_vm7 = vcmp.eq.f32.partialorder %v2654_v7, inf  ;;  %v1130_v34 = vand.u32 2147483648, %v2654_v7 }
 0x518   : > { %v1741_v62 = vpop.eup %1740  ;;  %v1117_v2 = vsel %vm1115_vm1, %v1116_v1, %v1114_v58  ;;  %1750 = vrsqrt.f32 %v2654_v7  ;;  %v1165_v13 = vmul.f32 %v2656_v54, %v1157_v11  ;;  %vm1129_vm8 = vcmp.eq.f32.partialorder %v2654_v7, 0.0 }
 0x519   : > { %v2661_v6 = vpop.eup %1742  ;;  %v1137_v55 = vmax.f32 %v1117_v2, 1e-12  ;;  %v1105_v30 = vmul.f32 %v1741_v62, %v2636_v42 }
 0x51a   : > { %v1156_v53 = vmul.f32 %v2661_v6, %v2613_v15  ;;  %v1173_v39 = vsel %vm644_vm6, %v1165_v13, 0.0 }
 0x51b   : > { %v1107_v38 = vsel %vm1106_vm2, %v2636_v42, %v1105_v30  ;;  %1752 = vrcp.f32 %v1137_v55 }
 0x51c   : > { %v1110_v63 = vsel %vm1108_vm3, %v1109_v32, %v1107_v38  ;;  %v1164_v14 = vmul.f32 %v2661_v6, %v1156_v53 }
 0x51d   : > { %v1136_v5 = vmax.f32 %v1110_v63, 1e-12  ;;  %v1745_v57 = vpop.eup %1744 }
 0x51e   : > { %v1119_v12 = vmul.f32 %v1745_v57, %v2646_v24  ;;  %v2673_v60 = vpop.eup %1746  ;;  %v1172_v46 = vsel %vm644_vm6, %v1164_v14, 0.0 }
 0x51f   : > { %1754 = vrcp.f32 %v1136_v5  ;;  %v1159_v40 = vmul.f32 %v2673_v60, %v2616_v21  ;;  %v1174_v36 = vadd.f32 %v1173_v39, %v1172_v46 }
 0x520   : > { %v1121_v9 = vsel %vm1120_vm4, %v2646_v24, %v1119_v12 }
 0x521   : > { %v2679_v23 = vpop.eup %1748  ;;  %v1124_v15 = vsel %vm1122_vm5, %v1123_v0, %v1121_v9  ;;  %v1167_v37 = vmul.f32 %v2673_v60, %v1159_v40 }
 0x522   : > { %v1751_v10 = vpop.eup %1750  ;;  %v1158_v22 = vmul.f32 %v2679_v23, %v2620_v33  ;;  %v1138_v27 = vmax.f32 %v1124_v15, 1e-12 }
 0x523   : > { %v1126_v29 = vmul.f32 %v1751_v10, %v2654_v7  ;;  %v1177_v52 = vsel %vm644_vm6, %v1167_v37, 0.0 }
 0x524   : > { %v1166_v45 = vmul.f32 %v2679_v23, %v1158_v22  ;;  %1756 = vrcp.f32 %v1138_v27 }
 0x525   : > { %v1128_v49 = vsel %vm1127_vm7, %v2654_v7, %v1126_v29  ;;  %v1753_v25 = vpop.eup %1752 }
 0x526   : > { %v1131_v33 = vsel %vm1129_vm8, %v1130_v34, %v1128_v49  ;;  %v1175_v16 = vsel %vm644_vm6, %v1166_v45, 0.0  ;;  %v1161_v48 = vmul.f32 %v1753_v25, %v2632_v28 }
 0x527   : > { %v1139_v31 = vmax.f32 %v1131_v33, 1e-12  ;;  %v1176_v21 = vadd.f32 %v1175_v16, %v1174_v36 }
 0x528   : > { %v1169_v20 = vmul.f32 %v1753_v25, %v1161_v48 }
 0x529   : > { %v1755_v43 = vpop.eup %1754  ;;  %1758 = vrcp.f32 %v1139_v31  ;;  %v1178_v4 = vadd.f32 %v1177_v52, %v1176_v21 }
 0x52a   : > { %v1160_v47 = vmul.f32 %v1755_v43, %v2636_v42  ;;  %v1181_v1 = vsel %vm644_vm6, %v1169_v20, 0.0 }
 0x52c   : > { %v1168_v51 = vmul.f32 %v1755_v43, %v1160_v47 }
 0x52e   : > { %v1179_v26 = vsel %vm644_vm6, %v1168_v51, 0.0  ;;  %v1757_v35 = vpop.eup %1756 }
 0x52f   : > { %v1180_v41 = vadd.f32 %v1179_v26, %v1178_v4  ;;  %v1162_v59 = vmul.f32 %v1757_v35, %v2646_v24 }
 0x531   : > { %v1170_v61 = vmul.f32 %v1757_v35, %v1162_v59  ;;  %v1182_v62 = vadd.f32 %v1181_v1, %v1180_v41 }
 0x533   : > { %v1759_v58 = vpop.eup %1758  ;;  %v1183_v28 = vsel %vm644_vm6, %v1170_v61, 0.0 }
 0x534   : > { %v1163_v42 = vmul.f32 %v1759_v58, %v2654_v7  ;;  %v1184_v55 = vadd.f32 %v1183_v28, %v1182_v62 }
 0x536   : > { %v1171_v2 = vmul.f32 %v1759_v58, %v1163_v42 }
 0x538   : > { %v1185_v30 = vsel %vm644_vm6, %v1171_v2, 0.0 }
 0x539   : > { %v1186_v32 = vadd.f32 %v1185_v30, %v1184_v55 }
 0x53b   : > { %1187 = vadd.xlane.f32.xlu1 %v1186_v32 }
 0x5c8   : > { %v1188_v38 = vpop.xlane.xlu1 %1187 }
 0x5c9   : > { %v1189_v11 = vrot.slane %v1188_v38, 4 }
 0x5cb   : > { %v1190_v53 = vadd.f32 %v1189_v11, %v1188_v38 }
 0x5cd   : > { %v1191_v63 = vrot.slane %v1190_v53, 2 }
 0x5cf   : > { %v1192_v24 = vadd.f32 %v1191_v63, %v1190_v53 }
 0x5d1   : > { %v1193_v5 = vrot.slane %v1192_v24, 1 }
 0x5d3   : > { %v1194_v57 = vadd.f32 %v1193_v5, %v1192_v24 }
 0x5d5   : > { %1539 = vpush %v1194_v57 }
 0x606   : > { %s1540_s21 = spop %1539 }
 0x607   : > { %v1196_v12 = vstv %s1540_s21 }
 0x608   : > { %1760 = vrsqrt.f32 %v1196_v12  ;;  %vm1199_vm9 = vcmp.eq.f32.partialorder %v1196_v12, inf  ;;  %v1202_v0 = vand.u32 2147483648, %v1196_v12  ;;  %vm1201_vm10 = vcmp.eq.f32.partialorder %v1196_v12, 0.0 }
 0x612   : > { %v1761_v7 = vpop.eup %1760 }
 0x613   : > { %v1198_v13 = vmul.f32 %v1761_v7, %v1196_v12 }
 0x615   : > { %v1200_v14 = vsel %vm1199_vm9, %v1196_v12, %v1198_v13 }
 0x616   : > { %v1203_v9 = vsel %vm1201_vm10, %v1202_v0, %v1200_v14 }
 0x617   : > { %v1204_v10 = vmax.f32 %v1203_v9, 1e-12 }
 0x619   : > { %1762 = vrcp.f32 %v1204_v10 }
 0x623   : > { %v1763_v15 = vpop.eup %1762 }
 0x624   : > { %v1207_v22 = vmul.f32 %v1763_v15, %v2661_v6  ;;  %v1208_v27 = vmul.f32 %v1763_v15, %v2656_v54  ;;  %v1209_v29 = vmul.f32 %v1763_v15, %v2679_v23  ;;  %v1210_v34 = vmul.f32 %v1763_v15, %v2673_v60 }
 0x625   : > { %v1211_v39 = vmul.f32 %v1763_v15, %v1755_v43  ;;  %v1212_v40 = vmul.f32 %v1763_v15, %v1753_v25  ;;  %v1213_v45 = vmul.f32 %v1763_v15, %v1757_v35  ;;  %v1214_v46 = vmul.f32 %v1763_v15, %v1759_v58 }
 0x626   : > { %v1215_v6 = vmul.f32 %v1207_v22, %v2580_v8  ;;  %v1216_v49 = vmul.f32 %v1208_v27, %v2578_v17  ;;  %v1217_v54 = vmul.f32 %v1209_v29, %v2588_v56  ;;  %v1218_v23 = vmul.f32 %v1210_v34, %v2586_v3 }
 0x627   : > { %v1219_v33 = vmul.f32 %v1211_v39, %v2596_v50  ;;  %v1220_v60 = vmul.f32 %v1212_v40, %v2594_v44  ;;  %v1221_v16 = vmul.f32 %v1213_v45, %v2602_v18  ;;  %v1222_v25 = vmul.f32 %v1214_v46, %v2604_v19 }
 0x628   : > { %1223 = vst [vmem:[%s2313_s13] sm:$0xff] %v1215_v6  ;;  %1224 = vst [vmem:[%s2313_s13 + $0x8] sm:$0xff] %v1216_v49 }
 0x629   : > { %1225 = vst [vmem:[%s2313_s13 + $0x10] sm:$0xff] %v1217_v54  ;;  %1226 = vst [vmem:[%s2313_s13 + $0x18] sm:$0xff] %v1218_v23 }
 0x62a   : > { %1227 = vst [vmem:[%s2313_s13 + $0x20] sm:$0xff] %v1219_v33  ;;  %1228 = vst [vmem:[%s2313_s13 + $0x28] sm:$0xff] %v1220_v60 }
 0x62b   : > { %1229 = vst [vmem:[%s2313_s13 + $0x30] sm:$0xff] %v1221_v16  ;;  %1230 = vst [vmem:[%s2313_s13 + $0x38] sm:$0xff] %v1222_v25 }
 0x62c PF: > { %s2844_s6 = sld [smem:[#allocation19_spill]]  ;;  %s1414_s4 = sshll.u32 %s1996_s22, 10 }
 0x62d   : > { %s2845_s26 = sld [smem:[#allocation23_spill]]  ;;  %s1245_s12 = sshll.u32 %s2313_s13, 4  ;;  %s2733_s12 = int_to_ptr.vmem [resolvable:$true] %s1245_s12 }
 0x62e   : > { %s2737_s15 = scalar_lea.sflag [#allocation6], %s273_s2  ;;  %s1878_s8 = scalar_lea.vmem %s2733_s12, 1024 }
 0x62f   : > { %p1879_p6 = scmp.ne.s32.totalorder %s2733_s12, %s1878_s8  ;;  %s2024_s22 = smov [#allocation12]  }
 0x630   : > { %s1882_s28 = sshll.u32 %s2024_s22, 4  ;;  %s1883_s28 = int_to_ptr.vmem [resolvable:$false] %s1882_s28 }
 0x631   : > { %s1884_s11 = scalar_lea.vmem %s1883_s28, 2048  ;;  %p1885_p7 = scmp.lt.s32.totalorder %s2733_s12, %s1883_s28 }
 0x632   : > { %p2846_p9 = scmp.ne.s32.totalorder %s2844_s6, 0  ;;  %p1886_p10 = scmp.lt.s32.totalorder %s1884_s11, %s1878_s8 }
 0x633   : > { %s2730_s27 = scalar_lea.hbm %s2845_s26, %s1414_s4 }
 0x634   : > { %p1880_p0 = pnand %p1879_p6, %p2846_p9  ;;  %p1887_p13 = por %p1886_p10, %p1885_p7 }
 0x636   : > { %p1881_p5 = pneg %p1880_p0 }
 0x638   : > { %p1888_p2 = pnand %p1887_p13, %p1881_p5 }
 0x63a   : > { %1891 = shalt.err (!%p1888_p2)
}
 0x63b   : > { %s1892_s18 = scalar_lea.hbm %s2730_s27, 1024  ;;  %s1896_s9 = scalar_lea.hbm %s2845_s26, 2048 }
 0x63c   : > { %p1893_p8 = scmp.ne.s32.totalorder %s2730_s27, %s1892_s18  ;;  %p1897_p4 = scmp.lt.u32.totalorder %s2730_s27, %s2845_s26 }
 0x63d   : > { %p1898_p12 = scmp.lt.u32.totalorder %s1896_s9, %s1892_s18  ;;  %p1900_p6 = scmp.lt.u32.totalorder %s1892_s18, %s2730_s27 }
 0x63e   : > { %p1894_p11 = pnand %p1893_p8, %p2846_p9 }
 0x63f   : > { %p1899_p3 = por %p1898_p12, %p1897_p4 }
 0x640   : > { %p1895_p1 = pneg %p1894_p11 }
 0x641   : > { %p1901_p0 = por %p1900_p6, %p1899_p3 }
 0x643   : > { %p1902_p5 = pnand %p1901_p0, %p1895_p1 }
 0x645   : > { %1905 = shalt.err (!%p1902_p5)
}
 0x646   : > { %s2025_s21 = smov 128   ;;  %s2026_s4 = smov 8  }
 0x647   : > { %1555 = dma.vmem_to_hbm [thread:$0]  (%p2846_p9), %s2733_s12, 1024, %s2730_s27, %s2737_s15, %s2025_s21, %s2025_s21, %s2026_s4  }
 0x648 PF: > { %s2847_s7 = sld [smem:[#allocation18_spill]]  ;;  %s2848_s25 = sld [smem:[#allocation17_spill]] }
 0x649   : > { %s2849_s8 = sld [smem:[#allocation20_spill]] }
 0x64e   : > { %p1582_p7 = scmp.ge.s32.totalorder %s2847_s7, 2  ;;  %s1260_s22 = sand.u32 1, %s2848_s25  }
 0x64f   : > { %p2850_p10 = scmp.ne.s32.totalorder %s2849_s8, 0  ;;  %s1261_s28 = scalar_lea.sflag [#allocation6], %s1260_s22 }
 0x651   : > { %p1572_p13 = pnand %p1582_p7, %p2850_p10 }
 0x653   : > { %1963 = dma.done.wait (!%p1572_p13), %s1261_s28, 1024  }
 0x654   : > { %1965 = vsyncadd (!%p1572_p13), %s1261_s28, 4294966272  ;;  %s22_s25 = sadd.s32 1, %s2847_s7   ;;  %s2851_s15 = smov %s1972_s16 }
 0x655   : > { %p19_p2 = scmp.ge.s32.totalorder %s22_s25, 10   ;;  %s2852_s16 = smov %s1976_s17 }
 0x656   : > { %s2853_s17 = smov %s2258_s14  ;;  %s2854_s18 = smov %s1984_s19 }
 0x657   : > { %s2855_s19 = smov %s1988_s20  ;;  %s2856_s20 = smov %s2263_s10 }
 0x658   : > { %s2857_s21 = smov %s2000_s23  ;;  %s2858_s22 = smov %s2004_s24 }
 0x659   : > { %s2859_s23 = smov %s2862_s1  ;;  %s2860_s24 = smov %s2866_s5 }
 0x65a   :  { %21 = sbr.rel (!%p19_p2) target bundleno = 15 (0xf), region = 101 }
 0x661   :  { %1266 = vsyncpa [#allocation5], 1 }
 0x662   :  { %1268 = vsyncpa [#allocation5 + $0x1], 1 }
 0x663   :  { %1269 = vsyncpa [#allocation8], 1 }
 0x664   :  { %1270 = vsyncpa [#allocation11], 1 }
 0x665   :  { %1271 = vsyncpa [#allocation6], 1 }
 0x666   :  { %1273 = vsyncpa [#allocation6 + $0x1], 1 }

</bundles_post_ra>
